<compile_context>
chip_gen: v5e
topology: v5e:2x2
jax: 0.10.0
libtpu: 0.0.40
codegen_flags: <defaults>
</compile_context>

<pallas_src>
import functools

import jax
import jax.numpy as jnp
from jax import lax
from jax.experimental import pallas as pl
from jax.experimental.pallas import tpu as pltpu


# ----------------------------- BlockSpec helpers -----------------------------

def _batch_spec(shape):
    """One batch element per grid step; full extent on remaining dims."""
    nd = len(shape)
    return pl.BlockSpec((1,) + tuple(shape[1:]), lambda i: (i,) + (0,) * (nd - 1))


def _shared_spec(shape):
    """Whole (parameter) array, same block for every grid step (VMEM)."""
    nd = len(shape)
    return pl.BlockSpec(tuple(shape), lambda i: (0,) * nd)


_SMEM_SPEC = pl.BlockSpec(memory_space=pltpu.MemorySpace.SMEM)


# ------------------------------ in-kernel helpers -----------------------------

def _ddot(a, b):
    """a [M, D] x b [N, D] -> [M, N]: contract trailing dims, no transpose."""
    return lax.dot_general(a, b, (((1,), (1,)), ((), ())),
                           preferred_element_type=jnp.float32)


def _softmax_last(x):
    x = x - jnp.max(x, axis=-1, keepdims=True)
    e = jnp.exp(x)
    return e * pl.reciprocal(jnp.sum(e, axis=-1, keepdims=True), approx=True)


# -------------------------------- fused kernel --------------------------------

def _sub_gmn_kernel(K, D, mask,
                    aq_ref, xq_ref, ada_ref, xda_ref, bs_ref,        # per-batch
                    w1_ref, b1_ref, w2_ref, b2_ref, w3_ref, b3_ref,  # GCN params
                    wstk_ref, v1_ref, v2_ref,                        # NTN params (VMEM)
                    bn_ref, convw_ref, convb_ref, finw_ref, finb_ref,  # scalars (SMEM)
                    out_ref):
    aq = aq_ref[0]        # [Q, Q]   normalized query adjacency
    xq = xq_ref[0]        # [Q, F]
    ada = ada_ref[0]      # [A, A]   normalized data adjacency
    xda = xda_ref[0]      # [A, F]
    bs = bs_ref[0]        # [Q, A]   b_same

    w1 = w1_ref[...]; b1 = b1_ref[...]
    w2 = w2_ref[...]; b2 = b2_ref[...]
    w3 = w3_ref[...]; b3 = b3_ref[...]

    def gcn3(a_hat, h):
        h1 = jnp.maximum(
            jnp.dot(a_hat, jnp.dot(h, w1, preferred_element_type=jnp.float32),
                    preferred_element_type=jnp.float32) + b1, 0.0)
        h2 = jnp.maximum(
            jnp.dot(a_hat, jnp.dot(h1, w2, preferred_element_type=jnp.float32),
                    preferred_element_type=jnp.float32) + b2, 0.0)
        h3 = jnp.maximum(
            jnp.dot(a_hat, jnp.dot(h2, w3, preferred_element_type=jnp.float32),
                    preferred_element_type=jnp.float32) + b3, 0.0)
        return h1, h2, h3

    q_embs = gcn3(aq, xq)       # (q1, q2, q3), each [Q, D]  -- stay in VMEM
    d_embs = gcn3(ada, xda)     # (da1, da2, da3), each [A, D]

    # Accumulator for the final 1x1 conv over the 3K+6 channels.
    fin = jnp.zeros(bs.shape, jnp.float32)

    for l in range(3):
        q = q_embs[l]           # [Q, D]
        d = d_embs[l]           # [A, D]

        att = jax.nn.sigmoid(_ddot(q, d))                 # [Q, A]
        vq = _ddot(q, v1_ref[l])                          # [Q, K]   V1 terms
        vd = _ddot(v2_ref[l], d)                          # [K, A]   V2 terms
        # All K bilinear left-products in ONE MXU push: [Q, D] @ [D, K*D]
        qW = jnp.dot(q, wstk_ref[l], preferred_element_type=jnp.float32)  # [Q, K*D]

        he_off = 3 + l * (K + 1)                          # con_end channel offset
        # channel 0 of he is b_same
        end_raw = convb_ref[l] + convw_ref[l, 0] * bs     # level 1x1 conv accumulator
        fin = fin + finw_ref[he_off] * bs                 # he contribution to final conv

        for kk in range(K):
            bil = _ddot(qW[:, kk * D:(kk + 1) * D], d)    # [Q, A]
            score = bil + vq[:, kk:kk + 1] + vd[kk:kk + 1, :] + bn_ref[l, kk]
            chan = jnp.maximum(score, 0.0) * att          # NTN_k * att
            end_raw = end_raw + convw_ref[l, kk + 1] * chan
            fin = fin + finw_ref[he_off + 1 + kk] * chan

        # end_l = softmax over the da axis, feeds the final conv with weight wce[l]
        fin = fin + finw_ref[l] * _softmax_last(end_raw)

    out = _softmax_last(fin + finb_ref[0])                # softmax over da axis
    if mask:
        out = out * bs
    out_ref[0] = out


# --------------------------------- glue / model -------------------------------

def normalize_adj(a):
    n = a.shape[-1]
    a = a + jnp.eye(n, dtype=a.dtype)
    deg = jnp.sum(a, axis=-1)
    dinv = 1.0 / jnp.sqrt(deg)
    return a * dinv[..., :, None] * dinv[..., None, :]


def sub_gmn_forward(params, x_da, a_da, x_q, a_q, b_same, mask=False):
    a_da_hat = normalize_adj(a_da)
    a_q_hat = normalize_adj(a_q)

    B, Q, _ = x_q.shape
    A = x_da.shape[1]
    g = params["gcn"]
    D = g["W1"].shape[1]
    K = params["ntn1"]["W"].shape[0]

    b1 = g["b1"].reshape(1, D)
    b2 = g["b2"].reshape(1, D)
    b3 = g["b3"].reshape(1, D)

    ntns = [params["ntn1"], params["ntn2"], params["ntn3"]]
    cons = [params["con1"], params["con2"], params["con3"]]

    # W[k, d, e] -> Wstk[l, d, k*D + e]  (host-side transpose/reshape) so the
    # kernel does a single q @ Wstk[l] MXU push per level.
    wstk = jnp.stack(
        [jnp.transpose(n["W"], (1, 0, 2)).reshape(D, K * D) for n in ntns])  # [3, D, K*D]
    v1 = jnp.stack([n["V1"] for n in ntns])                                   # [3, K, D]
    v2 = jnp.stack([n["V2"] for n in ntns])                                   # [3, K, D]
    bn = jnp.stack([n["b"] for n in ntns])                                    # [3, K]
    convw = jnp.stack([c["w"] for c in cons])                                 # [3, K+1]
    convb = jnp.stack([c["b"].reshape(()) for c in cons])                     # [3]
    finw = params["con_end"]["w"]                                             # [3K+6]
    finb = params["con_end"]["b"]                                             # [1]

    kernel = functools.partial(_sub_gmn_kernel, K, D, mask)

    return pl.pallas_call(
        kernel,
        out_shape=jax.ShapeDtypeStruct((B, Q, A), jnp.float32),
        grid=(B,),
        in_specs=[
            _batch_spec(a_q_hat.shape),
            _batch_spec(x_q.shape),
            _batch_spec(a_da_hat.shape),
            _batch_spec(x_da.shape),
            _batch_spec(b_same.shape),
            _shared_spec(g["W1"].shape),
            _shared_spec(b1.shape),
            _shared_spec(g["W2"].shape),
            _shared_spec(b2.shape),
            _shared_spec(g["W3"].shape),
            _shared_spec(b3.shape),
            _shared_spec(wstk.shape),
            _shared_spec(v1.shape),
            _shared_spec(v2.shape),
            _SMEM_SPEC,   # bn
            _SMEM_SPEC,   # convw
            _SMEM_SPEC,   # convb
            _SMEM_SPEC,   # finw
            _SMEM_SPEC,   # finb
        ],
        out_specs=_batch_spec((B, Q, A)),
        compiler_params=pltpu.CompilerParams(
            dimension_semantics=("parallel",)),   # keep both v7x TCs busy over B
    )(a_q_hat, x_q, a_da_hat, x_da, b_same,
      g["W1"], b1, g["W2"], b2, g["W3"], b3,
      wstk, v1, v2, bn, convw, convb, finw, finb)


def init_params(key, gcn_in, gcn_out, k):
    keys = jax.random.split(key, 32)
    i = iter(range(32))

    def nrm(shape):
        return 0.1 * jax.random.normal(keys[next(i)], shape, jnp.float32)

    params = {
        "gcn": {
            "W1": nrm((gcn_in, gcn_out)), "b1": nrm((gcn_out,)),
            "W2": nrm((gcn_out, gcn_out)), "b2": nrm((gcn_out,)),
            "W3": nrm((gcn_out, gcn_out)), "b3": nrm((gcn_out,)),
        },
    }
    for name in ("ntn1", "ntn2", "ntn3"):
        params[name] = {
            "W": nrm((k, gcn_out, gcn_out)),
            "V1": nrm((k, gcn_out)),
            "V2": nrm((k, gcn_out)),
            "b": nrm((k,)),
        }
    for name in ("con1", "con2", "con3"):
        params[name] = {"w": nrm((k + 1,)), "b": nrm((1,))}
    params["con_end"] = {"w": nrm((3 * k + 6,)), "b": nrm((1,))}
    return params


# ----------------------------------- main -------------------------------------

if __name__ == "__main__":
    # Small shapes: B=2, GCN_in=8, GCN_out=16, q_size=8, da_size=16, NTN_k=4
    B, GCN_IN, GCN_OUT, Q, A, K = 2, 8, 16, 8, 16, 4

    key = jax.random.PRNGKey(0)
    k1, k2, k3, k4, k5, kp = jax.random.split(key, 6)

    x_da = jax.random.normal(k1, (B, A, GCN_IN), jnp.float32)
    x_q = jax.random.normal(k2, (B, Q, GCN_IN), jnp.float32)

    a_da = (jax.random.uniform(k3, (B, A, A)) > 0.5).astype(jnp.float32)
    a_da = jnp.maximum(a_da, jnp.swapaxes(a_da, 1, 2))
    a_q = (jax.random.uniform(k4, (B, Q, Q)) > 0.5).astype(jnp.float32)
    a_q = jnp.maximum(a_q, jnp.swapaxes(a_q, 1, 2))

    b_same = (jax.random.uniform(k5, (B, Q, A)) > 0.5).astype(jnp.float32)

    params = init_params(kp, GCN_IN, GCN_OUT, K)

    out = sub_gmn_forward(params, x_da, a_da, x_q, a_q, b_same, mask=False)
    out = jax.block_until_ready(out)

    assert out.shape == (B, Q, A)
    assert bool(jnp.all(jnp.isfinite(out)))
    # rows are softmax-normalized over the da axis (approx reciprocal -> loose tol)
    assert bool(jnp.allclose(jnp.sum(out, axis=-1), 1.0, atol=5e-3))
    print("KERNEL_OK")
</pallas_src>

<mosaic_0001>
module attributes {stable_mosaic.version = 11 : i64} {
  func.func @_sub_gmn_kernel(%arg0: i32, %arg1: memref<1x8x8xf32, #tpu.memory_space<vmem>>, %arg2: memref<1x8x8xf32, #tpu.memory_space<vmem>>, %arg3: memref<1x16x16xf32, #tpu.memory_space<vmem>>, %arg4: memref<1x16x8xf32, #tpu.memory_space<vmem>>, %arg5: memref<1x8x16xf32, #tpu.memory_space<vmem>>, %arg6: memref<8x16xf32, #tpu.memory_space<vmem>>, %arg7: memref<1x16xf32, #tpu.memory_space<vmem>>, %arg8: memref<16x16xf32, #tpu.memory_space<vmem>>, %arg9: memref<1x16xf32, #tpu.memory_space<vmem>>, %arg10: memref<16x16xf32, #tpu.memory_space<vmem>>, %arg11: memref<1x16xf32, #tpu.memory_space<vmem>>, %arg12: memref<3x16x64xf32, #tpu.memory_space<vmem>>, %arg13: memref<3x4x16xf32, #tpu.memory_space<vmem>>, %arg14: memref<3x4x16xf32, #tpu.memory_space<vmem>>, %arg15: memref<3x4xf32, #tpu.memory_space<smem>>, %arg16: memref<3x5xf32, #tpu.memory_space<smem>>, %arg17: memref<3xf32, #tpu.memory_space<smem>>, %arg18: memref<18xf32, #tpu.memory_space<smem>>, %arg19: memref<1xf32, #tpu.memory_space<smem>>, %arg20: memref<1x8x16xf32, #tpu.memory_space<vmem>>) attributes {dimension_semantics = [#tpu.dimension_semantics<parallel>], iteration_bounds = array<i64: 2>, scalar_prefetch = 0 : i64, scratch_operands = 0 : i64, tpu.core_type = #tpu.core_type<tc>, window_params = [{transform_indices = @transform_0, window_bounds = array<i64: 1, 8, 8>}, {transform_indices = @transform_1, window_bounds = array<i64: 1, 8, 8>}, {transform_indices = @transform_2, window_bounds = array<i64: 1, 16, 16>}, {transform_indices = @transform_3, window_bounds = array<i64: 1, 16, 8>}, {transform_indices = @transform_4, window_bounds = array<i64: 1, 8, 16>}, {pipeline_mode = #tpu.pipeline_mode<synchronous>, transform_indices = @transform_5, window_bounds = array<i64: 8, 16>}, {pipeline_mode = #tpu.pipeline_mode<synchronous>, transform_indices = @transform_6, window_bounds = array<i64: 1, 16>}, {pipeline_mode = #tpu.pipeline_mode<synchronous>, transform_indices = @transform_7, window_bounds = array<i64: 16, 16>}, {pipeline_mode = #tpu.pipeline_mode<synchronous>, transform_indices = @transform_8, window_bounds = array<i64: 1, 16>}, {pipeline_mode = #tpu.pipeline_mode<synchronous>, transform_indices = @transform_9, window_bounds = array<i64: 16, 16>}, {pipeline_mode = #tpu.pipeline_mode<synchronous>, transform_indices = @transform_10, window_bounds = array<i64: 1, 16>}, {pipeline_mode = #tpu.pipeline_mode<synchronous>, transform_indices = @transform_11, window_bounds = array<i64: 3, 16, 64>}, {pipeline_mode = #tpu.pipeline_mode<synchronous>, transform_indices = @transform_12, window_bounds = array<i64: 3, 4, 16>}, {pipeline_mode = #tpu.pipeline_mode<synchronous>, transform_indices = @transform_13, window_bounds = array<i64: 3, 4, 16>}, {transform_indices = @transform_14, window_bounds = array<i64: 3, 4>}, {transform_indices = @transform_15, window_bounds = array<i64: 3, 5>}, {transform_indices = @transform_16, window_bounds = array<i64: 3>}, {transform_indices = @transform_17, window_bounds = array<i64: 18>}, {transform_indices = @transform_18, window_bounds = array<i64: 1>}, {transform_indices = @transform_19, window_bounds = array<i64: 1, 8, 16>}]} {
    %c0 = arith.constant 0 : index
    %c0_0 = arith.constant 0 : index
    %c0_1 = arith.constant 0 : index
    %0 = vector.load %arg1[%c0, %c0_0, %c0_1] : memref<1x8x8xf32, #tpu.memory_space<vmem>>, vector<1x8x8xf32>
    %1 = vector.shape_cast %0 : vector<1x8x8xf32> to vector<8x8xf32>
    %c0_2 = arith.constant 0 : index
    %c0_3 = arith.constant 0 : index
    %c0_4 = arith.constant 0 : index
    %2 = vector.load %arg2[%c0_2, %c0_3, %c0_4] : memref<1x8x8xf32, #tpu.memory_space<vmem>>, vector<1x8x8xf32>
    %3 = vector.shape_cast %2 : vector<1x8x8xf32> to vector<8x8xf32>
    %c0_5 = arith.constant 0 : index
    %c0_6 = arith.constant 0 : index
    %c0_7 = arith.constant 0 : index
    %4 = vector.load %arg3[%c0_5, %c0_6, %c0_7] : memref<1x16x16xf32, #tpu.memory_space<vmem>>, vector<1x16x16xf32>
    %5 = vector.shape_cast %4 : vector<1x16x16xf32> to vector<16x16xf32>
    %c0_8 = arith.constant 0 : index
    %c0_9 = arith.constant 0 : index
    %c0_10 = arith.constant 0 : index
    %6 = vector.load %arg4[%c0_8, %c0_9, %c0_10] : memref<1x16x8xf32, #tpu.memory_space<vmem>>, vector<1x16x8xf32>
    %7 = vector.shape_cast %6 : vector<1x16x8xf32> to vector<16x8xf32>
    %c0_11 = arith.constant 0 : index
    %c0_12 = arith.constant 0 : index
    %c0_13 = arith.constant 0 : index
    %8 = vector.load %arg5[%c0_11, %c0_12, %c0_13] : memref<1x8x16xf32, #tpu.memory_space<vmem>>, vector<1x8x16xf32>
    %9 = vector.shape_cast %8 : vector<1x8x16xf32> to vector<8x16xf32>
    %c0_14 = arith.constant 0 : index
    %c0_15 = arith.constant 0 : index
    %10 = vector.load %arg6[%c0_14, %c0_15] : memref<8x16xf32, #tpu.memory_space<vmem>>, vector<8x16xf32>
    %c0_16 = arith.constant 0 : index
    %c0_17 = arith.constant 0 : index
    %11 = vector.load %arg7[%c0_16, %c0_17] : memref<1x16xf32, #tpu.memory_space<vmem>>, vector<1x16xf32>
    %c0_18 = arith.constant 0 : index
    %c0_19 = arith.constant 0 : index
    %12 = vector.load %arg8[%c0_18, %c0_19] : memref<16x16xf32, #tpu.memory_space<vmem>>, vector<16x16xf32>
    %c0_20 = arith.constant 0 : index
    %c0_21 = arith.constant 0 : index
    %13 = vector.load %arg9[%c0_20, %c0_21] : memref<1x16xf32, #tpu.memory_space<vmem>>, vector<1x16xf32>
    %c0_22 = arith.constant 0 : index
    %c0_23 = arith.constant 0 : index
    %14 = vector.load %arg10[%c0_22, %c0_23] : memref<16x16xf32, #tpu.memory_space<vmem>>, vector<16x16xf32>
    %c0_24 = arith.constant 0 : index
    %c0_25 = arith.constant 0 : index
    %15 = vector.load %arg11[%c0_24, %c0_25] : memref<1x16xf32, #tpu.memory_space<vmem>>, vector<1x16xf32>
    %cst = arith.constant dense<0.000000e+00> : vector<8x16xf32>
    %16 = tpu.matmul %3, %10, %cst {dimension_numbers = #tpu.dot_dimension_numbers<[1], [0], [0], [1], [0, 0, 1, 1], [], []>} : vector<8x8xf32>, vector<8x16xf32>, vector<8x16xf32> -> vector<8x16xf32>
    %cst_26 = arith.constant dense<0.000000e+00> : vector<8x16xf32>
    %17 = tpu.matmul %1, %16, %cst_26 {dimension_numbers = #tpu.dot_dimension_numbers<[1], [0], [0], [1], [0, 0, 1, 1], [], []>} : vector<8x8xf32>, vector<8x16xf32>, vector<8x16xf32> -> vector<8x16xf32>
    %18 = vector.broadcast %11 : vector<1x16xf32> to vector<8x16xf32>
    %19 = arith.addf %17, %18 : vector<8x16xf32>
    %cst_27 = arith.constant 0.000000e+00 : f32
    %20 = vector.broadcast %cst_27 : f32 to vector<8x16xf32>
    %21 = arith.maximumf %19, %20 : vector<8x16xf32>
    %cst_28 = arith.constant dense<0.000000e+00> : vector<8x16xf32>
    %22 = tpu.matmul %21, %12, %cst_28 {dimension_numbers = #tpu.dot_dimension_numbers<[1], [0], [0], [1], [0, 0, 1, 1], [], []>} : vector<8x16xf32>, vector<16x16xf32>, vector<8x16xf32> -> vector<8x16xf32>
    %cst_29 = arith.constant dense<0.000000e+00> : vector<8x16xf32>
    %23 = tpu.matmul %1, %22, %cst_29 {dimension_numbers = #tpu.dot_dimension_numbers<[1], [0], [0], [1], [0, 0, 1, 1], [], []>} : vector<8x8xf32>, vector<8x16xf32>, vector<8x16xf32> -> vector<8x16xf32>
    %24 = vector.broadcast %13 : vector<1x16xf32> to vector<8x16xf32>
    %25 = arith.addf %23, %24 : vector<8x16xf32>
    %cst_30 = arith.constant 0.000000e+00 : f32
    %26 = vector.broadcast %cst_30 : f32 to vector<8x16xf32>
    %27 = arith.maximumf %25, %26 : vector<8x16xf32>
    %cst_31 = arith.constant dense<0.000000e+00> : vector<8x16xf32>
    %28 = tpu.matmul %27, %14, %cst_31 {dimension_numbers = #tpu.dot_dimension_numbers<[1], [0], [0], [1], [0, 0, 1, 1], [], []>} : vector<8x16xf32>, vector<16x16xf32>, vector<8x16xf32> -> vector<8x16xf32>
    %cst_32 = arith.constant dense<0.000000e+00> : vector<8x16xf32>
    %29 = tpu.matmul %1, %28, %cst_32 {dimension_numbers = #tpu.dot_dimension_numbers<[1], [0], [0], [1], [0, 0, 1, 1], [], []>} : vector<8x8xf32>, vector<8x16xf32>, vector<8x16xf32> -> vector<8x16xf32>
    %30 = vector.broadcast %15 : vector<1x16xf32> to vector<8x16xf32>
    %31 = arith.addf %29, %30 : vector<8x16xf32>
    %cst_33 = arith.constant 0.000000e+00 : f32
    %32 = vector.broadcast %cst_33 : f32 to vector<8x16xf32>
    %33 = arith.maximumf %31, %32 : vector<8x16xf32>
    %cst_34 = arith.constant dense<0.000000e+00> : vector<16x16xf32>
    %34 = tpu.matmul %7, %10, %cst_34 {dimension_numbers = #tpu.dot_dimension_numbers<[1], [0], [0], [1], [0, 0, 1, 1], [], []>} : vector<16x8xf32>, vector<8x16xf32>, vector<16x16xf32> -> vector<16x16xf32>
    %cst_35 = arith.constant dense<0.000000e+00> : vector<16x16xf32>
    %35 = tpu.matmul %5, %34, %cst_35 {dimension_numbers = #tpu.dot_dimension_numbers<[1], [0], [0], [1], [0, 0, 1, 1], [], []>} : vector<16x16xf32>, vector<16x16xf32>, vector<16x16xf32> -> vector<16x16xf32>
    %36 = vector.broadcast %11 : vector<1x16xf32> to vector<16x16xf32>
    %37 = arith.addf %35, %36 : vector<16x16xf32>
    %cst_36 = arith.constant 0.000000e+00 : f32
    %38 = vector.broadcast %cst_36 : f32 to vector<16x16xf32>
    %39 = arith.maximumf %37, %38 : vector<16x16xf32>
    %cst_37 = arith.constant dense<0.000000e+00> : vector<16x16xf32>
    %40 = tpu.matmul %39, %12, %cst_37 {dimension_numbers = #tpu.dot_dimension_numbers<[1], [0], [0], [1], [0, 0, 1, 1], [], []>} : vector<16x16xf32>, vector<16x16xf32>, vector<16x16xf32> -> vector<16x16xf32>
    %cst_38 = arith.constant dense<0.000000e+00> : vector<16x16xf32>
    %41 = tpu.matmul %5, %40, %cst_38 {dimension_numbers = #tpu.dot_dimension_numbers<[1], [0], [0], [1], [0, 0, 1, 1], [], []>} : vector<16x16xf32>, vector<16x16xf32>, vector<16x16xf32> -> vector<16x16xf32>
    %42 = vector.broadcast %13 : vector<1x16xf32> to vector<16x16xf32>
    %43 = arith.addf %41, %42 : vector<16x16xf32>
    %cst_39 = arith.constant 0.000000e+00 : f32
    %44 = vector.broadcast %cst_39 : f32 to vector<16x16xf32>
    %45 = arith.maximumf %43, %44 : vector<16x16xf32>
    %cst_40 = arith.constant dense<0.000000e+00> : vector<16x16xf32>
    %46 = tpu.matmul %45, %14, %cst_40 {dimension_numbers = #tpu.dot_dimension_numbers<[1], [0], [0], [1], [0, 0, 1, 1], [], []>} : vector<16x16xf32>, vector<16x16xf32>, vector<16x16xf32> -> vector<16x16xf32>
    %cst_41 = arith.constant dense<0.000000e+00> : vector<16x16xf32>
    %47 = tpu.matmul %5, %46, %cst_41 {dimension_numbers = #tpu.dot_dimension_numbers<[1], [0], [0], [1], [0, 0, 1, 1], [], []>} : vector<16x16xf32>, vector<16x16xf32>, vector<16x16xf32> -> vector<16x16xf32>
    %48 = vector.broadcast %15 : vector<1x16xf32> to vector<16x16xf32>
    %49 = arith.addf %47, %48 : vector<16x16xf32>
    %cst_42 = arith.constant 0.000000e+00 : f32
    %50 = vector.broadcast %cst_42 : f32 to vector<16x16xf32>
    %51 = arith.maximumf %49, %50 : vector<16x16xf32>
    %cst_43 = arith.constant 0.000000e+00 : f32
    %52 = vector.broadcast %cst_43 : f32 to vector<8x16xf32>
    %cst_44 = arith.constant dense<0.000000e+00> : vector<8x16xf32>
    %53 = tpu.matmul %21, %39, %cst_44 {dimension_numbers = #tpu.dot_dimension_numbers<[1], [1], [0], [0], [0, 0, 1, 0], [], []>} : vector<8x16xf32>, vector<16x16xf32>, vector<8x16xf32> -> vector<8x16xf32>
    %54 = arith.negf %53 : vector<8x16xf32>
    %55 = math.exp %54 : vector<8x16xf32>
    %cst_45 = arith.constant 1.000000e+00 : f32
    %56 = vector.broadcast %cst_45 : f32 to vector<8x16xf32>
    %57 = arith.addf %56, %55 : vector<8x16xf32>
    %58 = arith.divf %56, %57 : vector<8x16xf32>
    %c0_46 = arith.constant 0 : index
    %c0_47 = arith.constant 0 : index
    %c0_48 = arith.constant 0 : index
    %59 = vector.load %arg13[%c0_46, %c0_47, %c0_48] : memref<3x4x16xf32, #tpu.memory_space<vmem>>, vector<1x4x16xf32>
    %60 = vector.shape_cast %59 : vector<1x4x16xf32> to vector<4x16xf32>
    %cst_49 = arith.constant dense<0.000000e+00> : vector<8x4xf32>
    %61 = tpu.matmul %21, %60, %cst_49 {dimension_numbers = #tpu.dot_dimension_numbers<[1], [1], [0], [0], [0, 0, 1, 0], [], []>} : vector<8x16xf32>, vector<4x16xf32>, vector<8x4xf32> -> vector<8x4xf32>
    %c0_50 = arith.constant 0 : index
    %c0_51 = arith.constant 0 : index
    %c0_52 = arith.constant 0 : index
    %62 = vector.load %arg14[%c0_50, %c0_51, %c0_52] : memref<3x4x16xf32, #tpu.memory_space<vmem>>, vector<1x4x16xf32>
    %63 = vector.shape_cast %62 : vector<1x4x16xf32> to vector<4x16xf32>
    %cst_53 = arith.constant dense<0.000000e+00> : vector<4x16xf32>
    %64 = tpu.matmul %63, %39, %cst_53 {dimension_numbers = #tpu.dot_dimension_numbers<[1], [1], [0], [0], [0, 0, 1, 0], [], []>} : vector<4x16xf32>, vector<16x16xf32>, vector<4x16xf32> -> vector<4x16xf32>
    %c0_54 = arith.constant 0 : index
    %c0_55 = arith.constant 0 : index
    %c0_56 = arith.constant 0 : index
    %65 = vector.load %arg12[%c0_54, %c0_55, %c0_56] : memref<3x16x64xf32, #tpu.memory_space<vmem>>, vector<1x16x64xf32>
    %66 = vector.shape_cast %65 : vector<1x16x64xf32> to vector<16x64xf32>
    %cst_57 = arith.constant dense<0.000000e+00> : vector<8x64xf32>
    %67 = tpu.matmul %21, %66, %cst_57 {dimension_numbers = #tpu.dot_dimension_numbers<[1], [0], [0], [1], [0, 0, 1, 1], [], []>} : vector<8x16xf32>, vector<16x64xf32>, vector<8x64xf32> -> vector<8x64xf32>
    %c0_58 = arith.constant 0 : index
    %68 = memref.load %arg17[%c0_58] : memref<3xf32, #tpu.memory_space<smem>>
    %c0_59 = arith.constant 0 : index
    %c0_60 = arith.constant 0 : index
    %69 = memref.load %arg16[%c0_59, %c0_60] : memref<3x5xf32, #tpu.memory_space<smem>>
    %70 = vector.broadcast %69 : f32 to vector<8x16xf32>
    %71 = arith.mulf %70, %9 : vector<8x16xf32>
    %72 = vector.broadcast %68 : f32 to vector<8x16xf32>
    %73 = arith.addf %72, %71 : vector<8x16xf32>
    %c3 = arith.constant 3 : index
    %74 = memref.load %arg18[%c3] : memref<18xf32, #tpu.memory_space<smem>>
    %75 = vector.broadcast %74 : f32 to vector<8x16xf32>
    %76 = arith.mulf %75, %9 : vector<8x16xf32>
    %77 = arith.addf %52, %76 : vector<8x16xf32>
    %78 = vector.extract_strided_slice %67 {offsets = [0, 0], sizes = [8, 16], strides = [1, 1]} : vector<8x64xf32> to vector<8x16xf32>
    %cst_61 = arith.constant dense<0.000000e+00> : vector<8x16xf32>
    %79 = tpu.matmul %78, %39, %cst_61 {dimension_numbers = #tpu.dot_dimension_numbers<[1], [1], [0], [0], [0, 0, 1, 0], [], []>} : vector<8x16xf32>, vector<16x16xf32>, vector<8x16xf32> -> vector<8x16xf32>
    %80 = vector.extract_strided_slice %61 {offsets = [0, 0], sizes = [8, 1], strides = [1, 1]} : vector<8x4xf32> to vector<8x1xf32>
    %81 = vector.broadcast %80 : vector<8x1xf32> to vector<8x16xf32>
    %82 = arith.addf %79, %81 : vector<8x16xf32>
    %83 = vector.extract_strided_slice %64 {offsets = [0, 0], sizes = [1, 16], strides = [1, 1]} : vector<4x16xf32> to vector<1x16xf32>
    %84 = vector.broadcast %83 : vector<1x16xf32> to vector<8x16xf32>
    %85 = arith.addf %82, %84 : vector<8x16xf32>
    %c0_62 = arith.constant 0 : index
    %c0_63 = arith.constant 0 : index
    %86 = memref.load %arg15[%c0_62, %c0_63] : memref<3x4xf32, #tpu.memory_space<smem>>
    %87 = vector.broadcast %86 : f32 to vector<8x16xf32>
    %88 = arith.addf %85, %87 : vector<8x16xf32>
    %cst_64 = arith.constant 0.000000e+00 : f32
    %89 = vector.broadcast %cst_64 : f32 to vector<8x16xf32>
    %90 = arith.maximumf %88, %89 : vector<8x16xf32>
    %91 = arith.mulf %90, %58 : vector<8x16xf32>
    %c0_65 = arith.constant 0 : index
    %c1 = arith.constant 1 : index
    %92 = memref.load %arg16[%c0_65, %c1] : memref<3x5xf32, #tpu.memory_space<smem>>
    %93 = vector.broadcast %92 : f32 to vector<8x16xf32>
    %94 = arith.mulf %93, %91 : vector<8x16xf32>
    %95 = arith.addf %73, %94 : vector<8x16xf32>
    %c4 = arith.constant 4 : index
    %96 = memref.load %arg18[%c4] : memref<18xf32, #tpu.memory_space<smem>>
    %97 = vector.broadcast %96 : f32 to vector<8x16xf32>
    %98 = arith.mulf %97, %91 : vector<8x16xf32>
    %99 = arith.addf %77, %98 : vector<8x16xf32>
    %100 = vector.extract_strided_slice %67 {offsets = [0, 16], sizes = [8, 16], strides = [1, 1]} : vector<8x64xf32> to vector<8x16xf32>
    %cst_66 = arith.constant dense<0.000000e+00> : vector<8x16xf32>
    %101 = tpu.matmul %100, %39, %cst_66 {dimension_numbers = #tpu.dot_dimension_numbers<[1], [1], [0], [0], [0, 0, 1, 0], [], []>} : vector<8x16xf32>, vector<16x16xf32>, vector<8x16xf32> -> vector<8x16xf32>
    %102 = vector.extract_strided_slice %61 {offsets = [0, 1], sizes = [8, 1], strides = [1, 1]} : vector<8x4xf32> to vector<8x1xf32>
    %103 = vector.broadcast %102 : vector<8x1xf32> to vector<8x16xf32>
    %104 = arith.addf %101, %103 : vector<8x16xf32>
    %105 = vector.extract_strided_slice %64 {offsets = [1, 0], sizes = [1, 16], strides = [1, 1]} : vector<4x16xf32> to vector<1x16xf32>
    %106 = vector.broadcast %105 : vector<1x16xf32> to vector<8x16xf32>
    %107 = arith.addf %104, %106 : vector<8x16xf32>
    %c0_67 = arith.constant 0 : index
    %c1_68 = arith.constant 1 : index
    %108 = memref.load %arg15[%c0_67, %c1_68] : memref<3x4xf32, #tpu.memory_space<smem>>
    %109 = vector.broadcast %108 : f32 to vector<8x16xf32>
    %110 = arith.addf %107, %109 : vector<8x16xf32>
    %cst_69 = arith.constant 0.000000e+00 : f32
    %111 = vector.broadcast %cst_69 : f32 to vector<8x16xf32>
    %112 = arith.maximumf %110, %111 : vector<8x16xf32>
    %113 = arith.mulf %112, %58 : vector<8x16xf32>
    %c0_70 = arith.constant 0 : index
    %c2 = arith.constant 2 : index
    %114 = memref.load %arg16[%c0_70, %c2] : memref<3x5xf32, #tpu.memory_space<smem>>
    %115 = vector.broadcast %114 : f32 to vector<8x16xf32>
    %116 = arith.mulf %115, %113 : vector<8x16xf32>
    %117 = arith.addf %95, %116 : vector<8x16xf32>
    %c5 = arith.constant 5 : index
    %118 = memref.load %arg18[%c5] : memref<18xf32, #tpu.memory_space<smem>>
    %119 = vector.broadcast %118 : f32 to vector<8x16xf32>
    %120 = arith.mulf %119, %113 : vector<8x16xf32>
    %121 = arith.addf %99, %120 : vector<8x16xf32>
    %122 = vector.extract_strided_slice %67 {offsets = [0, 32], sizes = [8, 16], strides = [1, 1]} : vector<8x64xf32> to vector<8x16xf32>
    %cst_71 = arith.constant dense<0.000000e+00> : vector<8x16xf32>
    %123 = tpu.matmul %122, %39, %cst_71 {dimension_numbers = #tpu.dot_dimension_numbers<[1], [1], [0], [0], [0, 0, 1, 0], [], []>} : vector<8x16xf32>, vector<16x16xf32>, vector<8x16xf32> -> vector<8x16xf32>
    %124 = vector.extract_strided_slice %61 {offsets = [0, 2], sizes = [8, 1], strides = [1, 1]} : vector<8x4xf32> to vector<8x1xf32>
    %125 = vector.broadcast %124 : vector<8x1xf32> to vector<8x16xf32>
    %126 = arith.addf %123, %125 : vector<8x16xf32>
    %127 = vector.extract_strided_slice %64 {offsets = [2, 0], sizes = [1, 16], strides = [1, 1]} : vector<4x16xf32> to vector<1x16xf32>
    %128 = vector.broadcast %127 : vector<1x16xf32> to vector<8x16xf32>
    %129 = arith.addf %126, %128 : vector<8x16xf32>
    %c0_72 = arith.constant 0 : index
    %c2_73 = arith.constant 2 : index
    %130 = memref.load %arg15[%c0_72, %c2_73] : memref<3x4xf32, #tpu.memory_space<smem>>
    %131 = vector.broadcast %130 : f32 to vector<8x16xf32>
    %132 = arith.addf %129, %131 : vector<8x16xf32>
    %cst_74 = arith.constant 0.000000e+00 : f32
    %133 = vector.broadcast %cst_74 : f32 to vector<8x16xf32>
    %134 = arith.maximumf %132, %133 : vector<8x16xf32>
    %135 = arith.mulf %134, %58 : vector<8x16xf32>
    %c0_75 = arith.constant 0 : index
    %c3_76 = arith.constant 3 : index
    %136 = memref.load %arg16[%c0_75, %c3_76] : memref<3x5xf32, #tpu.memory_space<smem>>
    %137 = vector.broadcast %136 : f32 to vector<8x16xf32>
    %138 = arith.mulf %137, %135 : vector<8x16xf32>
    %139 = arith.addf %117, %138 : vector<8x16xf32>
    %c6 = arith.constant 6 : index
    %140 = memref.load %arg18[%c6] : memref<18xf32, #tpu.memory_space<smem>>
    %141 = vector.broadcast %140 : f32 to vector<8x16xf32>
    %142 = arith.mulf %141, %135 : vector<8x16xf32>
    %143 = arith.addf %121, %142 : vector<8x16xf32>
    %144 = vector.extract_strided_slice %67 {offsets = [0, 48], sizes = [8, 16], strides = [1, 1]} : vector<8x64xf32> to vector<8x16xf32>
    %cst_77 = arith.constant dense<0.000000e+00> : vector<8x16xf32>
    %145 = tpu.matmul %144, %39, %cst_77 {dimension_numbers = #tpu.dot_dimension_numbers<[1], [1], [0], [0], [0, 0, 1, 0], [], []>} : vector<8x16xf32>, vector<16x16xf32>, vector<8x16xf32> -> vector<8x16xf32>
    %146 = vector.extract_strided_slice %61 {offsets = [0, 3], sizes = [8, 1], strides = [1, 1]} : vector<8x4xf32> to vector<8x1xf32>
    %147 = vector.broadcast %146 : vector<8x1xf32> to vector<8x16xf32>
    %148 = arith.addf %145, %147 : vector<8x16xf32>
    %149 = vector.extract_strided_slice %64 {offsets = [3, 0], sizes = [1, 16], strides = [1, 1]} : vector<4x16xf32> to vector<1x16xf32>
    %150 = vector.broadcast %149 : vector<1x16xf32> to vector<8x16xf32>
    %151 = arith.addf %148, %150 : vector<8x16xf32>
    %c0_78 = arith.constant 0 : index
    %c3_79 = arith.constant 3 : index
    %152 = memref.load %arg15[%c0_78, %c3_79] : memref<3x4xf32, #tpu.memory_space<smem>>
    %153 = vector.broadcast %152 : f32 to vector<8x16xf32>
    %154 = arith.addf %151, %153 : vector<8x16xf32>
    %cst_80 = arith.constant 0.000000e+00 : f32
    %155 = vector.broadcast %cst_80 : f32 to vector<8x16xf32>
    %156 = arith.maximumf %154, %155 : vector<8x16xf32>
    %157 = arith.mulf %156, %58 : vector<8x16xf32>
    %c0_81 = arith.constant 0 : index
    %c4_82 = arith.constant 4 : index
    %158 = memref.load %arg16[%c0_81, %c4_82] : memref<3x5xf32, #tpu.memory_space<smem>>
    %159 = vector.broadcast %158 : f32 to vector<8x16xf32>
    %160 = arith.mulf %159, %157 : vector<8x16xf32>
    %161 = arith.addf %139, %160 : vector<8x16xf32>
    %c7 = arith.constant 7 : index
    %162 = memref.load %arg18[%c7] : memref<18xf32, #tpu.memory_space<smem>>
    %163 = vector.broadcast %162 : f32 to vector<8x16xf32>
    %164 = arith.mulf %163, %157 : vector<8x16xf32>
    %165 = arith.addf %143, %164 : vector<8x16xf32>
    %c0_83 = arith.constant 0 : index
    %166 = memref.load %arg18[%c0_83] : memref<18xf32, #tpu.memory_space<smem>>
    %cst_84 = arith.constant dense<0xFF800000> : vector<8xf32>
    %167 = vector.multi_reduction <maximumf>, %161, %cst_84 [1] : vector<8x16xf32> to vector<8xf32>
    %168 = vector.shape_cast %167 : vector<8xf32> to vector<8x1xf32>
    %169 = vector.broadcast %168 : vector<8x1xf32> to vector<8x16xf32>
    %170 = arith.subf %161, %169 : vector<8x16xf32>
    %171 = math.exp %170 : vector<8x16xf32>
    %cst_85 = arith.constant dense<0.000000e+00> : vector<8xf32>
    %172 = vector.multi_reduction <add>, %171, %cst_85 [1] : vector<8x16xf32> to vector<8xf32>
    %173 = vector.shape_cast %172 : vector<8xf32> to vector<8x1xf32>
    %174 = tpu.reciprocal %173 {approx = true} : vector<8x1xf32> -> vector<8x1xf32>
    %175 = vector.broadcast %174 : vector<8x1xf32> to vector<8x16xf32>
    %176 = arith.mulf %171, %175 : vector<8x16xf32>
    %177 = vector.broadcast %166 : f32 to vector<8x16xf32>
    %178 = arith.mulf %177, %176 : vector<8x16xf32>
    %179 = arith.addf %165, %178 : vector<8x16xf32>
    %cst_86 = arith.constant dense<0.000000e+00> : vector<8x16xf32>
    %180 = tpu.matmul %27, %45, %cst_86 {dimension_numbers = #tpu.dot_dimension_numbers<[1], [1], [0], [0], [0, 0, 1, 0], [], []>} : vector<8x16xf32>, vector<16x16xf32>, vector<8x16xf32> -> vector<8x16xf32>
    %181 = arith.negf %180 : vector<8x16xf32>
    %182 = math.exp %181 : vector<8x16xf32>
    %cst_87 = arith.constant 1.000000e+00 : f32
    %183 = vector.broadcast %cst_87 : f32 to vector<8x16xf32>
    %184 = arith.addf %183, %182 : vector<8x16xf32>
    %185 = arith.divf %183, %184 : vector<8x16xf32>
    %c1_88 = arith.constant 1 : index
    %c0_89 = arith.constant 0 : index
    %c0_90 = arith.constant 0 : index
    %186 = vector.load %arg13[%c1_88, %c0_89, %c0_90] : memref<3x4x16xf32, #tpu.memory_space<vmem>>, vector<1x4x16xf32>
    %187 = vector.shape_cast %186 : vector<1x4x16xf32> to vector<4x16xf32>
    %cst_91 = arith.constant dense<0.000000e+00> : vector<8x4xf32>
    %188 = tpu.matmul %27, %187, %cst_91 {dimension_numbers = #tpu.dot_dimension_numbers<[1], [1], [0], [0], [0, 0, 1, 0], [], []>} : vector<8x16xf32>, vector<4x16xf32>, vector<8x4xf32> -> vector<8x4xf32>
    %c1_92 = arith.constant 1 : index
    %c0_93 = arith.constant 0 : index
    %c0_94 = arith.constant 0 : index
    %189 = vector.load %arg14[%c1_92, %c0_93, %c0_94] : memref<3x4x16xf32, #tpu.memory_space<vmem>>, vector<1x4x16xf32>
    %190 = vector.shape_cast %189 : vector<1x4x16xf32> to vector<4x16xf32>
    %cst_95 = arith.constant dense<0.000000e+00> : vector<4x16xf32>
    %191 = tpu.matmul %190, %45, %cst_95 {dimension_numbers = #tpu.dot_dimension_numbers<[1], [1], [0], [0], [0, 0, 1, 0], [], []>} : vector<4x16xf32>, vector<16x16xf32>, vector<4x16xf32> -> vector<4x16xf32>
    %c1_96 = arith.constant 1 : index
    %c0_97 = arith.constant 0 : index
    %c0_98 = arith.constant 0 : index
    %192 = vector.load %arg12[%c1_96, %c0_97, %c0_98] : memref<3x16x64xf32, #tpu.memory_space<vmem>>, vector<1x16x64xf32>
    %193 = vector.shape_cast %192 : vector<1x16x64xf32> to vector<16x64xf32>
    %cst_99 = arith.constant dense<0.000000e+00> : vector<8x64xf32>
    %194 = tpu.matmul %27, %193, %cst_99 {dimension_numbers = #tpu.dot_dimension_numbers<[1], [0], [0], [1], [0, 0, 1, 1], [], []>} : vector<8x16xf32>, vector<16x64xf32>, vector<8x64xf32> -> vector<8x64xf32>
    %c1_100 = arith.constant 1 : index
    %195 = memref.load %arg17[%c1_100] : memref<3xf32, #tpu.memory_space<smem>>
    %c1_101 = arith.constant 1 : index
    %c0_102 = arith.constant 0 : index
    %196 = memref.load %arg16[%c1_101, %c0_102] : memref<3x5xf32, #tpu.memory_space<smem>>
    %197 = vector.broadcast %196 : f32 to vector<8x16xf32>
    %198 = arith.mulf %197, %9 : vector<8x16xf32>
    %199 = vector.broadcast %195 : f32 to vector<8x16xf32>
    %200 = arith.addf %199, %198 : vector<8x16xf32>
    %c8 = arith.constant 8 : index
    %201 = memref.load %arg18[%c8] : memref<18xf32, #tpu.memory_space<smem>>
    %202 = vector.broadcast %201 : f32 to vector<8x16xf32>
    %203 = arith.mulf %202, %9 : vector<8x16xf32>
    %204 = arith.addf %179, %203 : vector<8x16xf32>
    %205 = vector.extract_strided_slice %194 {offsets = [0, 0], sizes = [8, 16], strides = [1, 1]} : vector<8x64xf32> to vector<8x16xf32>
    %cst_103 = arith.constant dense<0.000000e+00> : vector<8x16xf32>
    %206 = tpu.matmul %205, %45, %cst_103 {dimension_numbers = #tpu.dot_dimension_numbers<[1], [1], [0], [0], [0, 0, 1, 0], [], []>} : vector<8x16xf32>, vector<16x16xf32>, vector<8x16xf32> -> vector<8x16xf32>
    %207 = vector.extract_strided_slice %188 {offsets = [0, 0], sizes = [8, 1], strides = [1, 1]} : vector<8x4xf32> to vector<8x1xf32>
    %208 = vector.broadcast %207 : vector<8x1xf32> to vector<8x16xf32>
    %209 = arith.addf %206, %208 : vector<8x16xf32>
    %210 = vector.extract_strided_slice %191 {offsets = [0, 0], sizes = [1, 16], strides = [1, 1]} : vector<4x16xf32> to vector<1x16xf32>
    %211 = vector.broadcast %210 : vector<1x16xf32> to vector<8x16xf32>
    %212 = arith.addf %209, %211 : vector<8x16xf32>
    %c1_104 = arith.constant 1 : index
    %c0_105 = arith.constant 0 : index
    %213 = memref.load %arg15[%c1_104, %c0_105] : memref<3x4xf32, #tpu.memory_space<smem>>
    %214 = vector.broadcast %213 : f32 to vector<8x16xf32>
    %215 = arith.addf %212, %214 : vector<8x16xf32>
    %cst_106 = arith.constant 0.000000e+00 : f32
    %216 = vector.broadcast %cst_106 : f32 to vector<8x16xf32>
    %217 = arith.maximumf %215, %216 : vector<8x16xf32>
    %218 = arith.mulf %217, %185 : vector<8x16xf32>
    %c1_107 = arith.constant 1 : index
    %c1_108 = arith.constant 1 : index
    %219 = memref.load %arg16[%c1_107, %c1_108] : memref<3x5xf32, #tpu.memory_space<smem>>
    %220 = vector.broadcast %219 : f32 to vector<8x16xf32>
    %221 = arith.mulf %220, %218 : vector<8x16xf32>
    %222 = arith.addf %200, %221 : vector<8x16xf32>
    %c9 = arith.constant 9 : index
    %223 = memref.load %arg18[%c9] : memref<18xf32, #tpu.memory_space<smem>>
    %224 = vector.broadcast %223 : f32 to vector<8x16xf32>
    %225 = arith.mulf %224, %218 : vector<8x16xf32>
    %226 = arith.addf %204, %225 : vector<8x16xf32>
    %227 = vector.extract_strided_slice %194 {offsets = [0, 16], sizes = [8, 16], strides = [1, 1]} : vector<8x64xf32> to vector<8x16xf32>
    %cst_109 = arith.constant dense<0.000000e+00> : vector<8x16xf32>
    %228 = tpu.matmul %227, %45, %cst_109 {dimension_numbers = #tpu.dot_dimension_numbers<[1], [1], [0], [0], [0, 0, 1, 0], [], []>} : vector<8x16xf32>, vector<16x16xf32>, vector<8x16xf32> -> vector<8x16xf32>
    %229 = vector.extract_strided_slice %188 {offsets = [0, 1], sizes = [8, 1], strides = [1, 1]} : vector<8x4xf32> to vector<8x1xf32>
    %230 = vector.broadcast %229 : vector<8x1xf32> to vector<8x16xf32>
    %231 = arith.addf %228, %230 : vector<8x16xf32>
    %232 = vector.extract_strided_slice %191 {offsets = [1, 0], sizes = [1, 16], strides = [1, 1]} : vector<4x16xf32> to vector<1x16xf32>
    %233 = vector.broadcast %232 : vector<1x16xf32> to vector<8x16xf32>
    %234 = arith.addf %231, %233 : vector<8x16xf32>
    %c1_110 = arith.constant 1 : index
    %c1_111 = arith.constant 1 : index
    %235 = memref.load %arg15[%c1_110, %c1_111] : memref<3x4xf32, #tpu.memory_space<smem>>
    %236 = vector.broadcast %235 : f32 to vector<8x16xf32>
    %237 = arith.addf %234, %236 : vector<8x16xf32>
    %cst_112 = arith.constant 0.000000e+00 : f32
    %238 = vector.broadcast %cst_112 : f32 to vector<8x16xf32>
    %239 = arith.maximumf %237, %238 : vector<8x16xf32>
    %240 = arith.mulf %239, %185 : vector<8x16xf32>
    %c1_113 = arith.constant 1 : index
    %c2_114 = arith.constant 2 : index
    %241 = memref.load %arg16[%c1_113, %c2_114] : memref<3x5xf32, #tpu.memory_space<smem>>
    %242 = vector.broadcast %241 : f32 to vector<8x16xf32>
    %243 = arith.mulf %242, %240 : vector<8x16xf32>
    %244 = arith.addf %222, %243 : vector<8x16xf32>
    %c10 = arith.constant 10 : index
    %245 = memref.load %arg18[%c10] : memref<18xf32, #tpu.memory_space<smem>>
    %246 = vector.broadcast %245 : f32 to vector<8x16xf32>
    %247 = arith.mulf %246, %240 : vector<8x16xf32>
    %248 = arith.addf %226, %247 : vector<8x16xf32>
    %249 = vector.extract_strided_slice %194 {offsets = [0, 32], sizes = [8, 16], strides = [1, 1]} : vector<8x64xf32> to vector<8x16xf32>
    %cst_115 = arith.constant dense<0.000000e+00> : vector<8x16xf32>
    %250 = tpu.matmul %249, %45, %cst_115 {dimension_numbers = #tpu.dot_dimension_numbers<[1], [1], [0], [0], [0, 0, 1, 0], [], []>} : vector<8x16xf32>, vector<16x16xf32>, vector<8x16xf32> -> vector<8x16xf32>
    %251 = vector.extract_strided_slice %188 {offsets = [0, 2], sizes = [8, 1], strides = [1, 1]} : vector<8x4xf32> to vector<8x1xf32>
    %252 = vector.broadcast %251 : vector<8x1xf32> to vector<8x16xf32>
    %253 = arith.addf %250, %252 : vector<8x16xf32>
    %254 = vector.extract_strided_slice %191 {offsets = [2, 0], sizes = [1, 16], strides = [1, 1]} : vector<4x16xf32> to vector<1x16xf32>
    %255 = vector.broadcast %254 : vector<1x16xf32> to vector<8x16xf32>
    %256 = arith.addf %253, %255 : vector<8x16xf32>
    %c1_116 = arith.constant 1 : index
    %c2_117 = arith.constant 2 : index
    %257 = memref.load %arg15[%c1_116, %c2_117] : memref<3x4xf32, #tpu.memory_space<smem>>
    %258 = vector.broadcast %257 : f32 to vector<8x16xf32>
    %259 = arith.addf %256, %258 : vector<8x16xf32>
    %cst_118 = arith.constant 0.000000e+00 : f32
    %260 = vector.broadcast %cst_118 : f32 to vector<8x16xf32>
    %261 = arith.maximumf %259, %260 : vector<8x16xf32>
    %262 = arith.mulf %261, %185 : vector<8x16xf32>
    %c1_119 = arith.constant 1 : index
    %c3_120 = arith.constant 3 : index
    %263 = memref.load %arg16[%c1_119, %c3_120] : memref<3x5xf32, #tpu.memory_space<smem>>
    %264 = vector.broadcast %263 : f32 to vector<8x16xf32>
    %265 = arith.mulf %264, %262 : vector<8x16xf32>
    %266 = arith.addf %244, %265 : vector<8x16xf32>
    %c11 = arith.constant 11 : index
    %267 = memref.load %arg18[%c11] : memref<18xf32, #tpu.memory_space<smem>>
    %268 = vector.broadcast %267 : f32 to vector<8x16xf32>
    %269 = arith.mulf %268, %262 : vector<8x16xf32>
    %270 = arith.addf %248, %269 : vector<8x16xf32>
    %271 = vector.extract_strided_slice %194 {offsets = [0, 48], sizes = [8, 16], strides = [1, 1]} : vector<8x64xf32> to vector<8x16xf32>
    %cst_121 = arith.constant dense<0.000000e+00> : vector<8x16xf32>
    %272 = tpu.matmul %271, %45, %cst_121 {dimension_numbers = #tpu.dot_dimension_numbers<[1], [1], [0], [0], [0, 0, 1, 0], [], []>} : vector<8x16xf32>, vector<16x16xf32>, vector<8x16xf32> -> vector<8x16xf32>
    %273 = vector.extract_strided_slice %188 {offsets = [0, 3], sizes = [8, 1], strides = [1, 1]} : vector<8x4xf32> to vector<8x1xf32>
    %274 = vector.broadcast %273 : vector<8x1xf32> to vector<8x16xf32>
    %275 = arith.addf %272, %274 : vector<8x16xf32>
    %276 = vector.extract_strided_slice %191 {offsets = [3, 0], sizes = [1, 16], strides = [1, 1]} : vector<4x16xf32> to vector<1x16xf32>
    %277 = vector.broadcast %276 : vector<1x16xf32> to vector<8x16xf32>
    %278 = arith.addf %275, %277 : vector<8x16xf32>
    %c1_122 = arith.constant 1 : index
    %c3_123 = arith.constant 3 : index
    %279 = memref.load %arg15[%c1_122, %c3_123] : memref<3x4xf32, #tpu.memory_space<smem>>
    %280 = vector.broadcast %279 : f32 to vector<8x16xf32>
    %281 = arith.addf %278, %280 : vector<8x16xf32>
    %cst_124 = arith.constant 0.000000e+00 : f32
    %282 = vector.broadcast %cst_124 : f32 to vector<8x16xf32>
    %283 = arith.maximumf %281, %282 : vector<8x16xf32>
    %284 = arith.mulf %283, %185 : vector<8x16xf32>
    %c1_125 = arith.constant 1 : index
    %c4_126 = arith.constant 4 : index
    %285 = memref.load %arg16[%c1_125, %c4_126] : memref<3x5xf32, #tpu.memory_space<smem>>
    %286 = vector.broadcast %285 : f32 to vector<8x16xf32>
    %287 = arith.mulf %286, %284 : vector<8x16xf32>
    %288 = arith.addf %266, %287 : vector<8x16xf32>
    %c12 = arith.constant 12 : index
    %289 = memref.load %arg18[%c12] : memref<18xf32, #tpu.memory_space<smem>>
    %290 = vector.broadcast %289 : f32 to vector<8x16xf32>
    %291 = arith.mulf %290, %284 : vector<8x16xf32>
    %292 = arith.addf %270, %291 : vector<8x16xf32>
    %c1_127 = arith.constant 1 : index
    %293 = memref.load %arg18[%c1_127] : memref<18xf32, #tpu.memory_space<smem>>
    %cst_128 = arith.constant dense<0xFF800000> : vector<8xf32>
    %294 = vector.multi_reduction <maximumf>, %288, %cst_128 [1] : vector<8x16xf32> to vector<8xf32>
    %295 = vector.shape_cast %294 : vector<8xf32> to vector<8x1xf32>
    %296 = vector.broadcast %295 : vector<8x1xf32> to vector<8x16xf32>
    %297 = arith.subf %288, %296 : vector<8x16xf32>
    %298 = math.exp %297 : vector<8x16xf32>
    %cst_129 = arith.constant dense<0.000000e+00> : vector<8xf32>
    %299 = vector.multi_reduction <add>, %298, %cst_129 [1] : vector<8x16xf32> to vector<8xf32>
    %300 = vector.shape_cast %299 : vector<8xf32> to vector<8x1xf32>
    %301 = tpu.reciprocal %300 {approx = true} : vector<8x1xf32> -> vector<8x1xf32>
    %302 = vector.broadcast %301 : vector<8x1xf32> to vector<8x16xf32>
    %303 = arith.mulf %298, %302 : vector<8x16xf32>
    %304 = vector.broadcast %293 : f32 to vector<8x16xf32>
    %305 = arith.mulf %304, %303 : vector<8x16xf32>
    %306 = arith.addf %292, %305 : vector<8x16xf32>
    %cst_130 = arith.constant dense<0.000000e+00> : vector<8x16xf32>
    %307 = tpu.matmul %33, %51, %cst_130 {dimension_numbers = #tpu.dot_dimension_numbers<[1], [1], [0], [0], [0, 0, 1, 0], [], []>} : vector<8x16xf32>, vector<16x16xf32>, vector<8x16xf32> -> vector<8x16xf32>
    %308 = arith.negf %307 : vector<8x16xf32>
    %309 = math.exp %308 : vector<8x16xf32>
    %cst_131 = arith.constant 1.000000e+00 : f32
    %310 = vector.broadcast %cst_131 : f32 to vector<8x16xf32>
    %311 = arith.addf %310, %309 : vector<8x16xf32>
    %312 = arith.divf %310, %311 : vector<8x16xf32>
    %c2_132 = arith.constant 2 : index
    %c0_133 = arith.constant 0 : index
    %c0_134 = arith.constant 0 : index
    %313 = vector.load %arg13[%c2_132, %c0_133, %c0_134] : memref<3x4x16xf32, #tpu.memory_space<vmem>>, vector<1x4x16xf32>
    %314 = vector.shape_cast %313 : vector<1x4x16xf32> to vector<4x16xf32>
    %cst_135 = arith.constant dense<0.000000e+00> : vector<8x4xf32>
    %315 = tpu.matmul %33, %314, %cst_135 {dimension_numbers = #tpu.dot_dimension_numbers<[1], [1], [0], [0], [0, 0, 1, 0], [], []>} : vector<8x16xf32>, vector<4x16xf32>, vector<8x4xf32> -> vector<8x4xf32>
    %c2_136 = arith.constant 2 : index
    %c0_137 = arith.constant 0 : index
    %c0_138 = arith.constant 0 : index
    %316 = vector.load %arg14[%c2_136, %c0_137, %c0_138] : memref<3x4x16xf32, #tpu.memory_space<vmem>>, vector<1x4x16xf32>
    %317 = vector.shape_cast %316 : vector<1x4x16xf32> to vector<4x16xf32>
    %cst_139 = arith.constant dense<0.000000e+00> : vector<4x16xf32>
    %318 = tpu.matmul %317, %51, %cst_139 {dimension_numbers = #tpu.dot_dimension_numbers<[1], [1], [0], [0], [0, 0, 1, 0], [], []>} : vector<4x16xf32>, vector<16x16xf32>, vector<4x16xf32> -> vector<4x16xf32>
    %c2_140 = arith.constant 2 : index
    %c0_141 = arith.constant 0 : index
    %c0_142 = arith.constant 0 : index
    %319 = vector.load %arg12[%c2_140, %c0_141, %c0_142] : memref<3x16x64xf32, #tpu.memory_space<vmem>>, vector<1x16x64xf32>
    %320 = vector.shape_cast %319 : vector<1x16x64xf32> to vector<16x64xf32>
    %cst_143 = arith.constant dense<0.000000e+00> : vector<8x64xf32>
    %321 = tpu.matmul %33, %320, %cst_143 {dimension_numbers = #tpu.dot_dimension_numbers<[1], [0], [0], [1], [0, 0, 1, 1], [], []>} : vector<8x16xf32>, vector<16x64xf32>, vector<8x64xf32> -> vector<8x64xf32>
    %c2_144 = arith.constant 2 : index
    %322 = memref.load %arg17[%c2_144] : memref<3xf32, #tpu.memory_space<smem>>
    %c2_145 = arith.constant 2 : index
    %c0_146 = arith.constant 0 : index
    %323 = memref.load %arg16[%c2_145, %c0_146] : memref<3x5xf32, #tpu.memory_space<smem>>
    %324 = vector.broadcast %323 : f32 to vector<8x16xf32>
    %325 = arith.mulf %324, %9 : vector<8x16xf32>
    %326 = vector.broadcast %322 : f32 to vector<8x16xf32>
    %327 = arith.addf %326, %325 : vector<8x16xf32>
    %c13 = arith.constant 13 : index
    %328 = memref.load %arg18[%c13] : memref<18xf32, #tpu.memory_space<smem>>
    %329 = vector.broadcast %328 : f32 to vector<8x16xf32>
    %330 = arith.mulf %329, %9 : vector<8x16xf32>
    %331 = arith.addf %306, %330 : vector<8x16xf32>
    %332 = vector.extract_strided_slice %321 {offsets = [0, 0], sizes = [8, 16], strides = [1, 1]} : vector<8x64xf32> to vector<8x16xf32>
    %cst_147 = arith.constant dense<0.000000e+00> : vector<8x16xf32>
    %333 = tpu.matmul %332, %51, %cst_147 {dimension_numbers = #tpu.dot_dimension_numbers<[1], [1], [0], [0], [0, 0, 1, 0], [], []>} : vector<8x16xf32>, vector<16x16xf32>, vector<8x16xf32> -> vector<8x16xf32>
    %334 = vector.extract_strided_slice %315 {offsets = [0, 0], sizes = [8, 1], strides = [1, 1]} : vector<8x4xf32> to vector<8x1xf32>
    %335 = vector.broadcast %334 : vector<8x1xf32> to vector<8x16xf32>
    %336 = arith.addf %333, %335 : vector<8x16xf32>
    %337 = vector.extract_strided_slice %318 {offsets = [0, 0], sizes = [1, 16], strides = [1, 1]} : vector<4x16xf32> to vector<1x16xf32>
    %338 = vector.broadcast %337 : vector<1x16xf32> to vector<8x16xf32>
    %339 = arith.addf %336, %338 : vector<8x16xf32>
    %c2_148 = arith.constant 2 : index
    %c0_149 = arith.constant 0 : index
    %340 = memref.load %arg15[%c2_148, %c0_149] : memref<3x4xf32, #tpu.memory_space<smem>>
    %341 = vector.broadcast %340 : f32 to vector<8x16xf32>
    %342 = arith.addf %339, %341 : vector<8x16xf32>
    %cst_150 = arith.constant 0.000000e+00 : f32
    %343 = vector.broadcast %cst_150 : f32 to vector<8x16xf32>
    %344 = arith.maximumf %342, %343 : vector<8x16xf32>
    %345 = arith.mulf %344, %312 : vector<8x16xf32>
    %c2_151 = arith.constant 2 : index
    %c1_152 = arith.constant 1 : index
    %346 = memref.load %arg16[%c2_151, %c1_152] : memref<3x5xf32, #tpu.memory_space<smem>>
    %347 = vector.broadcast %346 : f32 to vector<8x16xf32>
    %348 = arith.mulf %347, %345 : vector<8x16xf32>
    %349 = arith.addf %327, %348 : vector<8x16xf32>
    %c14 = arith.constant 14 : index
    %350 = memref.load %arg18[%c14] : memref<18xf32, #tpu.memory_space<smem>>
    %351 = vector.broadcast %350 : f32 to vector<8x16xf32>
    %352 = arith.mulf %351, %345 : vector<8x16xf32>
    %353 = arith.addf %331, %352 : vector<8x16xf32>
    %354 = vector.extract_strided_slice %321 {offsets = [0, 16], sizes = [8, 16], strides = [1, 1]} : vector<8x64xf32> to vector<8x16xf32>
    %cst_153 = arith.constant dense<0.000000e+00> : vector<8x16xf32>
    %355 = tpu.matmul %354, %51, %cst_153 {dimension_numbers = #tpu.dot_dimension_numbers<[1], [1], [0], [0], [0, 0, 1, 0], [], []>} : vector<8x16xf32>, vector<16x16xf32>, vector<8x16xf32> -> vector<8x16xf32>
    %356 = vector.extract_strided_slice %315 {offsets = [0, 1], sizes = [8, 1], strides = [1, 1]} : vector<8x4xf32> to vector<8x1xf32>
    %357 = vector.broadcast %356 : vector<8x1xf32> to vector<8x16xf32>
    %358 = arith.addf %355, %357 : vector<8x16xf32>
    %359 = vector.extract_strided_slice %318 {offsets = [1, 0], sizes = [1, 16], strides = [1, 1]} : vector<4x16xf32> to vector<1x16xf32>
    %360 = vector.broadcast %359 : vector<1x16xf32> to vector<8x16xf32>
    %361 = arith.addf %358, %360 : vector<8x16xf32>
    %c2_154 = arith.constant 2 : index
    %c1_155 = arith.constant 1 : index
    %362 = memref.load %arg15[%c2_154, %c1_155] : memref<3x4xf32, #tpu.memory_space<smem>>
    %363 = vector.broadcast %362 : f32 to vector<8x16xf32>
    %364 = arith.addf %361, %363 : vector<8x16xf32>
    %cst_156 = arith.constant 0.000000e+00 : f32
    %365 = vector.broadcast %cst_156 : f32 to vector<8x16xf32>
    %366 = arith.maximumf %364, %365 : vector<8x16xf32>
    %367 = arith.mulf %366, %312 : vector<8x16xf32>
    %c2_157 = arith.constant 2 : index
    %c2_158 = arith.constant 2 : index
    %368 = memref.load %arg16[%c2_157, %c2_158] : memref<3x5xf32, #tpu.memory_space<smem>>
    %369 = vector.broadcast %368 : f32 to vector<8x16xf32>
    %370 = arith.mulf %369, %367 : vector<8x16xf32>
    %371 = arith.addf %349, %370 : vector<8x16xf32>
    %c15 = arith.constant 15 : index
    %372 = memref.load %arg18[%c15] : memref<18xf32, #tpu.memory_space<smem>>
    %373 = vector.broadcast %372 : f32 to vector<8x16xf32>
    %374 = arith.mulf %373, %367 : vector<8x16xf32>
    %375 = arith.addf %353, %374 : vector<8x16xf32>
    %376 = vector.extract_strided_slice %321 {offsets = [0, 32], sizes = [8, 16], strides = [1, 1]} : vector<8x64xf32> to vector<8x16xf32>
    %cst_159 = arith.constant dense<0.000000e+00> : vector<8x16xf32>
    %377 = tpu.matmul %376, %51, %cst_159 {dimension_numbers = #tpu.dot_dimension_numbers<[1], [1], [0], [0], [0, 0, 1, 0], [], []>} : vector<8x16xf32>, vector<16x16xf32>, vector<8x16xf32> -> vector<8x16xf32>
    %378 = vector.extract_strided_slice %315 {offsets = [0, 2], sizes = [8, 1], strides = [1, 1]} : vector<8x4xf32> to vector<8x1xf32>
    %379 = vector.broadcast %378 : vector<8x1xf32> to vector<8x16xf32>
    %380 = arith.addf %377, %379 : vector<8x16xf32>
    %381 = vector.extract_strided_slice %318 {offsets = [2, 0], sizes = [1, 16], strides = [1, 1]} : vector<4x16xf32> to vector<1x16xf32>
    %382 = vector.broadcast %381 : vector<1x16xf32> to vector<8x16xf32>
    %383 = arith.addf %380, %382 : vector<8x16xf32>
    %c2_160 = arith.constant 2 : index
    %c2_161 = arith.constant 2 : index
    %384 = memref.load %arg15[%c2_160, %c2_161] : memref<3x4xf32, #tpu.memory_space<smem>>
    %385 = vector.broadcast %384 : f32 to vector<8x16xf32>
    %386 = arith.addf %383, %385 : vector<8x16xf32>
    %cst_162 = arith.constant 0.000000e+00 : f32
    %387 = vector.broadcast %cst_162 : f32 to vector<8x16xf32>
    %388 = arith.maximumf %386, %387 : vector<8x16xf32>
    %389 = arith.mulf %388, %312 : vector<8x16xf32>
    %c2_163 = arith.constant 2 : index
    %c3_164 = arith.constant 3 : index
    %390 = memref.load %arg16[%c2_163, %c3_164] : memref<3x5xf32, #tpu.memory_space<smem>>
    %391 = vector.broadcast %390 : f32 to vector<8x16xf32>
    %392 = arith.mulf %391, %389 : vector<8x16xf32>
    %393 = arith.addf %371, %392 : vector<8x16xf32>
    %c16 = arith.constant 16 : index
    %394 = memref.load %arg18[%c16] : memref<18xf32, #tpu.memory_space<smem>>
    %395 = vector.broadcast %394 : f32 to vector<8x16xf32>
    %396 = arith.mulf %395, %389 : vector<8x16xf32>
    %397 = arith.addf %375, %396 : vector<8x16xf32>
    %398 = vector.extract_strided_slice %321 {offsets = [0, 48], sizes = [8, 16], strides = [1, 1]} : vector<8x64xf32> to vector<8x16xf32>
    %cst_165 = arith.constant dense<0.000000e+00> : vector<8x16xf32>
    %399 = tpu.matmul %398, %51, %cst_165 {dimension_numbers = #tpu.dot_dimension_numbers<[1], [1], [0], [0], [0, 0, 1, 0], [], []>} : vector<8x16xf32>, vector<16x16xf32>, vector<8x16xf32> -> vector<8x16xf32>
    %400 = vector.extract_strided_slice %315 {offsets = [0, 3], sizes = [8, 1], strides = [1, 1]} : vector<8x4xf32> to vector<8x1xf32>
    %401 = vector.broadcast %400 : vector<8x1xf32> to vector<8x16xf32>
    %402 = arith.addf %399, %401 : vector<8x16xf32>
    %403 = vector.extract_strided_slice %318 {offsets = [3, 0], sizes = [1, 16], strides = [1, 1]} : vector<4x16xf32> to vector<1x16xf32>
    %404 = vector.broadcast %403 : vector<1x16xf32> to vector<8x16xf32>
    %405 = arith.addf %402, %404 : vector<8x16xf32>
    %c2_166 = arith.constant 2 : index
    %c3_167 = arith.constant 3 : index
    %406 = memref.load %arg15[%c2_166, %c3_167] : memref<3x4xf32, #tpu.memory_space<smem>>
    %407 = vector.broadcast %406 : f32 to vector<8x16xf32>
    %408 = arith.addf %405, %407 : vector<8x16xf32>
    %cst_168 = arith.constant 0.000000e+00 : f32
    %409 = vector.broadcast %cst_168 : f32 to vector<8x16xf32>
    %410 = arith.maximumf %408, %409 : vector<8x16xf32>
    %411 = arith.mulf %410, %312 : vector<8x16xf32>
    %c2_169 = arith.constant 2 : index
    %c4_170 = arith.constant 4 : index
    %412 = memref.load %arg16[%c2_169, %c4_170] : memref<3x5xf32, #tpu.memory_space<smem>>
    %413 = vector.broadcast %412 : f32 to vector<8x16xf32>
    %414 = arith.mulf %413, %411 : vector<8x16xf32>
    %415 = arith.addf %393, %414 : vector<8x16xf32>
    %c17 = arith.constant 17 : index
    %416 = memref.load %arg18[%c17] : memref<18xf32, #tpu.memory_space<smem>>
    %417 = vector.broadcast %416 : f32 to vector<8x16xf32>
    %418 = arith.mulf %417, %411 : vector<8x16xf32>
    %419 = arith.addf %397, %418 : vector<8x16xf32>
    %c2_171 = arith.constant 2 : index
    %420 = memref.load %arg18[%c2_171] : memref<18xf32, #tpu.memory_space<smem>>
    %cst_172 = arith.constant dense<0xFF800000> : vector<8xf32>
    %421 = vector.multi_reduction <maximumf>, %415, %cst_172 [1] : vector<8x16xf32> to vector<8xf32>
    %422 = vector.shape_cast %421 : vector<8xf32> to vector<8x1xf32>
    %423 = vector.broadcast %422 : vector<8x1xf32> to vector<8x16xf32>
    %424 = arith.subf %415, %423 : vector<8x16xf32>
    %425 = math.exp %424 : vector<8x16xf32>
    %cst_173 = arith.constant dense<0.000000e+00> : vector<8xf32>
    %426 = vector.multi_reduction <add>, %425, %cst_173 [1] : vector<8x16xf32> to vector<8xf32>
    %427 = vector.shape_cast %426 : vector<8xf32> to vector<8x1xf32>
    %428 = tpu.reciprocal %427 {approx = true} : vector<8x1xf32> -> vector<8x1xf32>
    %429 = vector.broadcast %428 : vector<8x1xf32> to vector<8x16xf32>
    %430 = arith.mulf %425, %429 : vector<8x16xf32>
    %431 = vector.broadcast %420 : f32 to vector<8x16xf32>
    %432 = arith.mulf %431, %430 : vector<8x16xf32>
    %433 = arith.addf %419, %432 : vector<8x16xf32>
    %c0_174 = arith.constant 0 : index
    %434 = memref.load %arg19[%c0_174] : memref<1xf32, #tpu.memory_space<smem>>
    %435 = vector.broadcast %434 : f32 to vector<8x16xf32>
    %436 = arith.addf %433, %435 : vector<8x16xf32>
    %cst_175 = arith.constant dense<0xFF800000> : vector<8xf32>
    %437 = vector.multi_reduction <maximumf>, %436, %cst_175 [1] : vector<8x16xf32> to vector<8xf32>
    %438 = vector.shape_cast %437 : vector<8xf32> to vector<8x1xf32>
    %439 = vector.broadcast %438 : vector<8x1xf32> to vector<8x16xf32>
    %440 = arith.subf %436, %439 : vector<8x16xf32>
    %441 = math.exp %440 : vector<8x16xf32>
    %cst_176 = arith.constant dense<0.000000e+00> : vector<8xf32>
    %442 = vector.multi_reduction <add>, %441, %cst_176 [1] : vector<8x16xf32> to vector<8xf32>
    %443 = vector.shape_cast %442 : vector<8xf32> to vector<8x1xf32>
    %444 = tpu.reciprocal %443 {approx = true} : vector<8x1xf32> -> vector<8x1xf32>
    %445 = vector.broadcast %444 : vector<8x1xf32> to vector<8x16xf32>
    %446 = arith.mulf %441, %445 : vector<8x16xf32>
    %c0_177 = arith.constant 0 : index
    %c0_178 = arith.constant 0 : index
    %c0_179 = arith.constant 0 : index
    %447 = vector.load %arg20[%c0_177, %c0_178, %c0_179] : memref<1x8x16xf32, #tpu.memory_space<vmem>>, vector<1x8x16xf32>
    %448 = vector.shape_cast %447 : vector<1x8x16xf32> to vector<8x16xf32>
    %449 = vector.shape_cast %446 : vector<8x16xf32> to vector<1x8x16xf32>
    tpu.vector_store %arg20[%c0_177, %c0_178, %c0_179], %449 {strides = array<i32>} : memref<1x8x16xf32, #tpu.memory_space<vmem>>, vector<1x8x16xf32>,
    return
  }
  func.func @transform_0(%arg0: i32) -> (i32, i32, i32) {
    %c0_i32 = arith.constant 0 : i32
    %c0_i32_0 = arith.constant 0 : i32
    %c0_i32_1 = arith.constant 0 : i32
    return %arg0, %c0_i32, %c0_i32_0 : i32, i32, i32
  }
  func.func @transform_1(%arg0: i32) -> (i32, i32, i32) {
    %c0_i32 = arith.constant 0 : i32
    %c0_i32_0 = arith.constant 0 : i32
    %c0_i32_1 = arith.constant 0 : i32
    return %arg0, %c0_i32, %c0_i32_0 : i32, i32, i32
  }
  func.func @transform_2(%arg0: i32) -> (i32, i32, i32) {
    %c0_i32 = arith.constant 0 : i32
    %c0_i32_0 = arith.constant 0 : i32
    %c0_i32_1 = arith.constant 0 : i32
    return %arg0, %c0_i32, %c0_i32_0 : i32, i32, i32
  }
  func.func @transform_3(%arg0: i32) -> (i32, i32, i32) {
    %c0_i32 = arith.constant 0 : i32
    %c0_i32_0 = arith.constant 0 : i32
    %c0_i32_1 = arith.constant 0 : i32
    return %arg0, %c0_i32, %c0_i32_0 : i32, i32, i32
  }
  func.func @transform_4(%arg0: i32) -> (i32, i32, i32) {
    %c0_i32 = arith.constant 0 : i32
    %c0_i32_0 = arith.constant 0 : i32
    %c0_i32_1 = arith.constant 0 : i32
    return %arg0, %c0_i32, %c0_i32_0 : i32, i32, i32
  }
  func.func @transform_5(%arg0: i32) -> (i32, i32) {
    %c0_i32 = arith.constant 0 : i32
    %c0_i32_0 = arith.constant 0 : i32
    %c0_i32_1 = arith.constant 0 : i32
    return %c0_i32, %c0_i32_0 : i32, i32
  }
  func.func @transform_6(%arg0: i32) -> (i32, i32) {
    %c0_i32 = arith.constant 0 : i32
    %c0_i32_0 = arith.constant 0 : i32
    %c0_i32_1 = arith.constant 0 : i32
    return %c0_i32, %c0_i32_0 : i32, i32
  }
  func.func @transform_7(%arg0: i32) -> (i32, i32) {
    %c0_i32 = arith.constant 0 : i32
    %c0_i32_0 = arith.constant 0 : i32
    %c0_i32_1 = arith.constant 0 : i32
    return %c0_i32, %c0_i32_0 : i32, i32
  }
  func.func @transform_8(%arg0: i32) -> (i32, i32) {
    %c0_i32 = arith.constant 0 : i32
    %c0_i32_0 = arith.constant 0 : i32
    %c0_i32_1 = arith.constant 0 : i32
    return %c0_i32, %c0_i32_0 : i32, i32
  }
  func.func @transform_9(%arg0: i32) -> (i32, i32) {
    %c0_i32 = arith.constant 0 : i32
    %c0_i32_0 = arith.constant 0 : i32
    %c0_i32_1 = arith.constant 0 : i32
    return %c0_i32, %c0_i32_0 : i32, i32
  }
  func.func @transform_10(%arg0: i32) -> (i32, i32) {
    %c0_i32 = arith.constant 0 : i32
    %c0_i32_0 = arith.constant 0 : i32
    %c0_i32_1 = arith.constant 0 : i32
    return %c0_i32, %c0_i32_0 : i32, i32
  }
  func.func @transform_11(%arg0: i32) -> (i32, i32, i32) {
    %c0_i32 = arith.constant 0 : i32
    %c0_i32_0 = arith.constant 0 : i32
    %c0_i32_1 = arith.constant 0 : i32
    %c0_i32_2 = arith.constant 0 : i32
    return %c0_i32, %c0_i32_0, %c0_i32_1 : i32, i32, i32
  }
  func.func @transform_12(%arg0: i32) -> (i32, i32, i32) {
    %c0_i32 = arith.constant 0 : i32
    %c0_i32_0 = arith.constant 0 : i32
    %c0_i32_1 = arith.constant 0 : i32
    %c0_i32_2 = arith.constant 0 : i32
    return %c0_i32, %c0_i32_0, %c0_i32_1 : i32, i32, i32
  }
  func.func @transform_13(%arg0: i32) -> (i32, i32, i32) {
    %c0_i32 = arith.constant 0 : i32
    %c0_i32_0 = arith.constant 0 : i32
    %c0_i32_1 = arith.constant 0 : i32
    %c0_i32_2 = arith.constant 0 : i32
    return %c0_i32, %c0_i32_0, %c0_i32_1 : i32, i32, i32
  }
  func.func @transform_14(%arg0: i32) -> (i32, i32) {
    %c0_i32 = arith.constant 0 : i32
    %c0_i32_0 = arith.constant 0 : i32
    %c0_i32_1 = arith.constant 0 : i32
    return %c0_i32, %c0_i32_0 : i32, i32
  }
  func.func @transform_15(%arg0: i32) -> (i32, i32) {
    %c0_i32 = arith.constant 0 : i32
    %c0_i32_0 = arith.constant 0 : i32
    %c0_i32_1 = arith.constant 0 : i32
    return %c0_i32, %c0_i32_0 : i32, i32
  }
  func.func @transform_16(%arg0: i32) -> i32 {
    %c0_i32 = arith.constant 0 : i32
    %c0_i32_0 = arith.constant 0 : i32
    return %c0_i32 : i32
  }
  func.func @transform_17(%arg0: i32) -> i32 {
    %c0_i32 = arith.constant 0 : i32
    %c0_i32_0 = arith.constant 0 : i32
    return %c0_i32 : i32
  }
  func.func @transform_18(%arg0: i32) -> i32 {
    %c0_i32 = arith.constant 0 : i32
    %c0_i32_0 = arith.constant 0 : i32
    return %c0_i32 : i32
  }
  func.func @transform_19(%arg0: i32) -> (i32, i32, i32) {
    %c0_i32 = arith.constant 0 : i32
    %c0_i32_0 = arith.constant 0 : i32
    %c0_i32_1 = arith.constant 0 : i32
    return %arg0, %c0_i32, %c0_i32_0 : i32, i32, i32
  }
}

</mosaic_0001>

<bundles_post_ra>
// kernel: tpu_custom_call.1
= control target key start
LH: loop header
LB: loop body
LE: loop exit
PB: predicated region body
PF: predicated region fallthrough
CT: control target
= control target key end

     0   :  { %s4222_s0 = inlined_call_operand.hbm [shape: f32[2,8,8], index: 0, kind: input, shape index: {}]   ;;  %s4223_s1 = inlined_call_operand.hbm [shape: f32[2,8,8], index: 1, kind: input, shape index: {}]   ;;  %s4224_s2 = inlined_call_operand.hbm [shape: f32[2,16,16], index: 2, kind: input, shape index: {}]   ;;  %s4225_s3 = inlined_call_operand.vmem [shape: f32[2,16,8], index: 3, kind: input, shape index: {}]   ;;  %s4226_s4 = inlined_call_operand.hbm [shape: f32[2,8,16], index: 4, kind: input, shape index: {}]   ;;  %s4227_s5 = inlined_call_operand.hbm [shape: f32[8,16], index: 5, kind: input, shape index: {}]   ;;  %s4228_s6 = inlined_call_operand.hbm [shape: f32[1,16], index: 6, kind: input, shape index: {}]   ;;  %s4229_s7 = inlined_call_operand.hbm [shape: f32[16,16], index: 7, kind: input, shape index: {}]   ;;  %s4230_s8 = inlined_call_operand.hbm [shape: f32[1,16], index: 8, kind: input, shape index: {}]   ;;  %s4231_s9 = inlined_call_operand.hbm [shape: f32[16,16], index: 9, kind: input, shape index: {}]   ;;  %s4232_s10 = inlined_call_operand.hbm [shape: f32[1,16], index: 10, kind: input, shape index: {}]   ;;  %s4233_s11 = inlined_call_operand.vmem [shape: f32[3,16,64], index: 11, kind: input, shape index: {}]   ;;  %s4234_s12 = inlined_call_operand.vmem [shape: f32[3,4,16], index: 12, kind: input, shape index: {}]   ;;  %s4235_s13 = inlined_call_operand.hbm [shape: f32[3,4,16], index: 13, kind: input, shape index: {}]   ;;  %s4236_s14 = inlined_call_operand.hbm [shape: f32[3,4], index: 14, kind: input, shape index: {}]   ;;  %s4237_s15 = inlined_call_operand.vmem [shape: f32[3,5], index: 15, kind: input, shape index: {}]   ;;  %s4238_s16 = inlined_call_operand.vmem [shape: f32[3], index: 16, kind: input, shape index: {}]   ;;  %s4239_s17 = inlined_call_operand.vmem [shape: f32[18], index: 17, kind: input, shape index: {}]   ;;  %s4240_s18 = inlined_call_operand.<no memory space> [shape: f32[1], index: 18, kind: input, shape index: {}]   ;;  %s4241_s19 = inlined_call_operand.hbm [shape: f32[2,8,16], index: 19, kind: output, shape index: {}]  }
   0x1   :  { %4264 = sst [smem:[#allocation48_spill]] %s4222_s0 }
   0x2   :  { %4265 = sst [smem:[#allocation49_spill]] %s4223_s1 }
   0x3   :  { %4266 = sst [smem:[#allocation50_spill]] %s4224_s2 }
   0x4   :  { %4267 = sst [smem:[#allocation51_spill]] %s4225_s3 }
   0x5   :  { %4268 = sst [smem:[#allocation52_spill]] %s4227_s5 }
   0x6   :  { %4269 = sst [smem:[#allocation53_spill]] %s4228_s6 }
   0x7   :  { %4270 = sst [smem:[#allocation54_spill]] %s4229_s7 }
   0x8   :  { %4271 = sst [smem:[#allocation55_spill]] %s4230_s8 }
   0x9   :  { %4272 = sst [smem:[#allocation56_spill]] %s4231_s9 }
   0xa   :  { %4273 = sst [smem:[#allocation57_spill]] %s4232_s10 }
   0xb   :  { %4274 = sst [smem:[#allocation58_spill]] %s4233_s11 }
   0xc   :  { %4275 = sst [smem:[#allocation59_spill]] %s4234_s12 }
   0xd   :  { %4276 = sst [smem:[#allocation60_spill]] %s4238_s16 }
   0xe   :  { %4277 = sst [smem:[#allocation61_spill]] %s4241_s19 }
   0xf   :  { %24 = sst [smem:[#allocation2]] %s4240_s18 }
  0x10   :  { %25 = vsyncpa [#allocation4], 0 }
  0x11   :  { %27 = vsyncpa [#allocation4 + $0x1], 0 }
  0x12   :  { %28 = vsyncpa [#allocation9], 0 }
  0x13   :  { %30 = vsyncpa [#allocation9 + $0x1], 0 }
  0x14   :  { %31 = vsyncpa [#allocation12], 0 }
  0x15   :  { %33 = vsyncpa [#allocation12 + $0x1], 0 }
  0x16   :  { %34 = vsyncpa [#allocation15], 0 }
  0x17   :  { %35 = vsyncpa [#allocation18], 0 }
  0x18   :  { %36 = vsyncpa [#allocation21], 0 }
  0x19   :  { %37 = vsyncpa [#allocation6], 0 }
  0x1a   :  { %38 = vsyncpa [#allocation7], 0 }
  0x1b   :  { %39 = vsyncpa [#allocation26], 0 }
  0x1c   :  { %40 = vsyncpa [#allocation5], 0 }
  0x1d   :  { %42 = vsyncpa [#allocation5 + $0x1], 0  ;;  %s3495_s20 = smov 0   ;;  %s3497_s21 = smov 0  }
  0x1e   :  { %s3499_s1 = smov 0   ;;  %s3501_s18 = smov 0  }
  0x1f LB: > { %4278 = sst [smem:[#allocation40_spill]] %s3356_s20  ;;  %s3519_s24 = sadd.s32 4294967295, %s3368_s18   ;;  %s3368_s18 = sphi %s3501_s18, %s4337_s18   ;;  %s3364_s1 = sphi %s3499_s1, %s4339_s1   ;;  %s3360_s21 = sphi %s3497_s21, %s4341_s21   ;;  %s3356_s20 = sphi %s3495_s20, %s4340_s20  }
  0x20   : > { %4279 = sst [smem:[#allocation41_spill]] %s3364_s1  ;;  %p2468_p0 = scmp.ge.s32.totalorder %s3368_s18, 1 }
  0x21   : > { %s4280_s5 = sld [smem:[#allocation52_spill]]  ;;  %p4254_p1 = scmp.eq.s32.totalorder %s3519_s24, 0 }
  0x22   : > { %4281 = sst [smem:[#allocation42_spill]] %s3519_s24  ;;  %p503_p2 = scmp.lt.s32.totalorder %s3368_s18, 3 }
  0x23   : > { %s3370_s3 = smov [#allocation13]   ;;  %s4283_s6 = sld [smem:[#allocation53_spill]] }
  0x24   : > { %p3524_p3 = pnand %p2468_p0, %p503_p2  ;;  %s517_s26 = sshll.u32 %s3370_s3, 4  ;;  %s518_s26 = int_to_ptr.vmem [resolvable:$true] %s517_s26 }
  0x25   : > { %s3371_s30 = smov [#allocation14]   ;;  %s4285_s8 = sld [smem:[#allocation55_spill]] }
  0x26   : > { %p2703_p5 = pneg %p3524_p3  ;;  %s529_s22 = sshll.u32 %s3371_s30, 4  ;;  %s530_s22 = int_to_ptr.vmem [resolvable:$true] %s529_s22 }
  0x27   : > { %s515_s23 = sshll.u32 %s4280_s5, 4  ;;  %s4286_s10 = sld [smem:[#allocation57_spill]]  ;;  %s516_s23 = int_to_ptr.hbm [resolvable:$true] %s515_s23 }
  0x28   : > { %p3536_p6 = pnand %p2703_p5, %p4254_p1  ;;  %s3372_s30 = smov [#allocation17]  }
  0x29   : > { %s527_s29 = sshll.u32 %s4283_s6, 4  ;;  %s555_s19 = sshll.u32 %s3372_s30, 4  ;;  %s528_s29 = int_to_ptr.hbm [resolvable:$true] %s527_s29  ;;  %s556_s19 = int_to_ptr.vmem [resolvable:$true] %s555_s19 }
  0x2a   : > { %2706 = dma.hbm_to_vmem [thread:$0]  (!%p3536_p6), %s516_s23, 128, %s518_s26, [#allocation12]  }
  0x2b   : > { %s553_s5 = sshll.u32 %s4285_s8, 4  ;;  %s3373_s23 = smov [#allocation20]   ;;  %s554_s5 = int_to_ptr.hbm [resolvable:$true] %s553_s5 }
  0x2c   : > { %2709 = dma.hbm_to_vmem [thread:$0]  (!%p3536_p6), %s528_s29, 16, %s530_s22, [#allocation15]  }
  0x2d   : > { %s579_s6 = sshll.u32 %s4286_s10, 4  ;;  %s581_s26 = sshll.u32 %s3373_s23, 4  ;;  %s580_s6 = int_to_ptr.hbm [resolvable:$true] %s579_s6  ;;  %s582_s26 = int_to_ptr.vmem [resolvable:$true] %s581_s26 }
  0x2e   : > { %2715 = dma.hbm_to_vmem [thread:$0]  (!%p3536_p6), %s554_s5, 16, %s556_s19, [#allocation18]  }
  0x2f   : > { %s4287_s16 = sld [smem:[#allocation60_spill]]  ;;  %s3374_s3 = smov [#allocation25]  }
  0x30   : > { %2721 = dma.hbm_to_vmem [thread:$0]  (!%p3536_p6), %s580_s6, 16, %s582_s26, [#allocation21]  }
  0x31   : > { %s2467_s5 = sadd.s32 4294967294, %s3368_s18   ;;  %s3561_s19 = sadd.s32 1, %s3368_s18  }
  0x32   : > { %4288 = sst [smem:[#allocation43_spill]] %s3561_s19  ;;  %s55_s27 = sadd.s32 1, %s3364_s1 }
  0x33   : > { %s52_s28 = ssub.s32 %s3368_s18, %s3561_s19  ;;  %p62_p7 = scmp.ne.s32.totalorder %s3364_s1, %s3360_s21 }
  0x34   : > { %p53_p8 = scmp.eq.s32.totalorder %s52_s28, 0  ;;  %p63_p9 = scmp.eq.s32.totalorder %s3368_s18, 0 }
  0x35   : > { %s631_s2 = sshll.u32 %s4287_s16, 4  ;;  %p68_p10 = scmp.ne.s32.totalorder %s3360_s21, %s3356_s20  ;;  %s632_s2 = int_to_ptr.vmem [resolvable:$true] %s631_s2 }
  0x36   : > { %2733 = dma.vmem_to_smem (!%p3536_p6), %s632_s2, 16, %s3374_s3, [#allocation26]  }
  0x37   : > { %p490_p11 = scmp.eq.s32.totalorder %s3519_s24, 1  ;;  %p64_p12 = por %p63_p9, %p62_p7 }
  0x38   : > { %s3573_s30 = scalar_select %p53_p8, %s3364_s1, %s55_s27  }
  0x39   : > { %p3577_p13 = por %p4254_p1, %p68_p10  ;;  %p3581_p0 = por %p490_p11, %p62_p7 }
  0x3a   : > { %4289 = sst [smem:[#allocation44_spill]] %s3573_s30  ;;  %p496_p2 = scmp.eq.s32.totalorder %s2467_s5, 1 }
  0x3b   : > { %s4290_s6 = scalar_select %p3577_p13, 1, 0 }
  0x3c   : > { %s4292_s23 = scalar_select %p3581_p0, 1, 0 }
  0x3d   : > { %4291 = sst [smem:[#allocation45_spill]] %s4290_s6  ;;  %p2765_p5 = scmp.lt.s32.totalorder %s3368_s18, 2 }
  0x3e   : > { %4293 = sst [smem:[#allocation46_spill]] %s4292_s23  ;;  %s3587_s26 = sand.u32 1, %s3364_s1  }
  0x3f   : > { %p3589_p4 = por %p496_p2, %p68_p10  ;;  %s3594_s22 = sshll.u32 %s3587_s26, 3 }
  0x40   : > { %s3597_s2 = sshll.u32 %s3368_s18, 3  ;;  %p3599_p7 = pnand %p2765_p5, %p64_p12 }
  0x41   : > { %s4294_s29 = scalar_select %p3589_p4, 1, 0 }
  0x42   : > { %s4255_s5 = sand.u32 1, %s3368_s18   ;;  %s4297_s8 = sld [smem:[#allocation49_spill]] }
  0x43   : > { %4295 = sst [smem:[#allocation47_spill]] %s4294_s29  ;;  %s678_s16 = scalar_lea.vmem [#allocation8], %s3594_s22 }
  0x44   : > { %s686_s30 = sshll.u32 %s678_s16, 4  ;;  %s2485_s19 = sshll.u32 %s3587_s26, 4  ;;  %s687_s30 = int_to_ptr.vmem [resolvable:$true] %s686_s30 }
  0x45   : > { %s3612_s29 = scalar_lea.sflag [#allocation9], %s4255_s5  ;;  %p3015_p9 = pneg %p3599_p7 }
  0x48   : > { %s682_s10 = scalar_lea.hbm %s4297_s8, %s3597_s2 }
  0x49   : > { %s684_s1 = sshll.u32 %s682_s10, 4  ;;  %s3018_s10 = scalar_lea.hbm %s4297_s8, 16  ;;  %s685_s1 = int_to_ptr.hbm [resolvable:$true] %s684_s1 }
  0x4a   : > { %s3011_s20 = sshra.s32 %s685_s1, 4  ;;  %s3012_s20 = int_to_ptr.hbm [resolvable:$true] %s3011_s20 }
  0x4b   : > { %s3013_s23 = scalar_lea.hbm %s3012_s20, 8  ;;  %p3019_p12 = scmp.lt.s32.totalorder %s3012_s20, %s4297_s8 }
  0x4c   : > { %p3014_p8 = scmp.ne.s32.totalorder %s3012_s20, %s3013_s23  ;;  %p3020_p2 = scmp.lt.s32.totalorder %s3018_s10, %s3013_s23 }
  0x4e   : > { %p3016_p10 = pnand %p3015_p9, %p3014_p8  ;;  %p3021_p5 = por %p3020_p2, %p3019_p12 }
  0x50   : > { %p3017_p11 = pneg %p3016_p10 }
  0x52   : > { %p3022_p1 = pnand %p3021_p5, %p3017_p11 }
  0x54   : > { %3025 = shalt.err (!%p3022_p1)
}
  0x55   : > { %2743 = dma.hbm_to_vmem [thread:$0]  (!%p3599_p7), %s685_s1, 128, %s687_s30, %s3612_s29  }
  0x56   : > { %s697_s5 = scalar_lea.vmem [#allocation10], %s2485_s19  ;;  %s4298_s7 = sld [smem:[#allocation54_spill]] }
  0x57   : > { %s705_s12 = sshll.u32 %s697_s5, 4  ;;  %s3375_s11 = smov [#allocation16]   ;;  %s3631_s12 = int_to_ptr.vmem [resolvable:$true] %s705_s12 }
  0x58   : > { %s540_s20 = sshll.u32 %s3375_s11, 4  ;;  %s4299_s9 = sld [smem:[#allocation56_spill]]  ;;  %s541_s20 = int_to_ptr.vmem [resolvable:$true] %s540_s20 }
  0x59   : > { %s4261_s16 = smov 128   ;;  %s4262_s1 = smov 8  }
  0x5a   : > { %s3378_s24 = smov [#allocation19]   ;;  %s596_s5 = sshll.u32 %s4235_s13, 4  ;;  %s597_s5 = int_to_ptr.hbm [resolvable:$true] %s596_s5 }
  0x5b   : > { %s566_s19 = sshll.u32 %s3378_s24, 4  ;;  %s3379_s11 = smov [#allocation22]   ;;  %s567_s19 = int_to_ptr.vmem [resolvable:$true] %s566_s19 }
  0x5c   : > { %s538_s27 = sshll.u32 %s4298_s7, 4  ;;  %s598_s23 = sshll.u32 %s3379_s11, 4  ;;  %s539_s27 = int_to_ptr.hbm [resolvable:$true] %s538_s27  ;;  %s599_s23 = int_to_ptr.vmem [resolvable:$true] %s598_s23 }
  0x5d   : > { %2712 = dma.hbm_to_vmem [thread:$0]  (!%p3536_p6), %s539_s27, 256, %s541_s20, [#allocation15], %s4261_s16, %s4261_s16, %s4262_s1  }
  0x5e   : > { %s564_s10 = sshll.u32 %s4299_s9, 4  ;;  %s611_s28 = sshll.u32 %s4236_s14, 4  ;;  %s565_s10 = int_to_ptr.hbm [resolvable:$true] %s564_s10  ;;  %s612_s28 = int_to_ptr.hbm [resolvable:$true] %s611_s28 }
  0x5f   : > { %2718 = dma.hbm_to_vmem [thread:$0]  (!%p3536_p6), %s565_s10, 256, %s567_s19, [#allocation18], %s4261_s16, %s4261_s16, %s4262_s1  }
  0x60   : > { %s3380_s24 = smov 64   ;;  %s3381_s30 = smov 4  }
  0x61   : > { %2724 = dma.hbm_to_vmem [thread:$0]  (!%p3536_p6), %s597_s5, 192, %s599_s23, [#allocation21], %s3380_s24, %s3380_s24, %s3381_s30  }
  0x62   : > { %s3382_s6 = smov [#allocation23]   ;;  %s621_s11 = sshll.u32 %s4237_s15, 4  ;;  %s622_s11 = int_to_ptr.vmem [resolvable:$true] %s621_s11 }
  0x63   : > { %2727 = dma.hbm_to_smem (!%p3536_p6), %s612_s28, 64, %s3382_s6, [#allocation6]  }
  0x64   : > { %s641_s20 = sshll.u32 %s4239_s17, 4  ;;  %s3383_s1 = smov [#allocation24]   ;;  %s642_s20 = int_to_ptr.vmem [resolvable:$true] %s641_s20 }
  0x65   : > { %2730 = dma.vmem_to_smem (!%p3536_p6), %s622_s11, 64, %s3383_s1, [#allocation7]  }
  0x66   : > { %s3384_s5 = smov [#allocation27]   ;;  %s4300_s24 = sld [smem:[#allocation48_spill]] }
  0x67   : > { %2736 = dma.vmem_to_smem (!%p3536_p6), %s642_s20, 16, %s3384_s5, [#allocation26]  }
  0x68   : > { %s659_s6 = scalar_lea.vmem [#allocation3], %s3594_s22  ;;  %s2647_s7 = sshll.u32 %s3368_s18, 4 }
  0x69   : > { %s667_s10 = sshll.u32 %s659_s6, 4  ;;  %s656_s16 = scalar_lea.sflag [#allocation4], %s3587_s26  ;;  %s668_s10 = int_to_ptr.vmem [resolvable:$true] %s667_s10 }
  0x6c   : > { %s663_s30 = scalar_lea.hbm %s4300_s24, %s3597_s2  ;;  %s3183_s11 = scalar_lea.hbm %s4300_s24, 16 }
  0x6d   : > { %s665_s19 = sshll.u32 %s663_s30, 4  ;;  %s666_s19 = int_to_ptr.hbm [resolvable:$true] %s665_s19 }
  0x6e   : > { %s3176_s27 = sshra.s32 %s666_s19, 4  ;;  %s3177_s27 = int_to_ptr.hbm [resolvable:$true] %s3176_s27 }
  0x6f   : > { %s3178_s8 = scalar_lea.hbm %s3177_s27, 8  ;;  %p3184_p6 = scmp.lt.s32.totalorder %s3177_s27, %s4300_s24 }
  0x70   : > { %p3179_p1 = scmp.ne.s32.totalorder %s3177_s27, %s3178_s8  ;;  %p3185_p11 = scmp.lt.s32.totalorder %s3183_s11, %s3178_s8 }
  0x72   : > { %p3181_p8 = pnand %p3179_p1, %p3015_p9  ;;  %p3186_p12 = por %p3185_p11, %p3184_p6 }
  0x74   : > { %p3182_p10 = pneg %p3181_p8 }
  0x76   : > { %p3187_p2 = pnand %p3186_p12, %p3182_p10 }
  0x78   : > { %3190 = shalt.err (!%p3187_p2)
}
  0x79   : > { %2740 = dma.hbm_to_vmem [thread:$0]  (!%p3599_p7), %s666_s19, 128, %s668_s10, %s656_s16  }
  0x7a   : > { %s4301_s28 = sld [smem:[#allocation50_spill]]  ;;  %s731_s9 = scalar_lea.hbm %s4226_s4, %s3597_s2 }
  0x7b   : > { %s3691_s27 = sshll.u32 %s731_s9, 4  ;;  %s734_s27 = int_to_ptr.hbm [resolvable:$true] %s3691_s27 }
  0x80   : > { %s702_s30 = scalar_lea.hbm %s4301_s28, %s2647_s7  ;;  %s3213_s7 = scalar_lea.hbm %s4301_s28, 32 }
  0x81   : > { %s703_s6 = sshll.u32 %s702_s30, 4  ;;  %s704_s6 = int_to_ptr.hbm [resolvable:$true] %s703_s6 }
  0x82   : > { %s3206_s8 = sshra.s32 %s704_s6, 4  ;;  %s3207_s8 = int_to_ptr.hbm [resolvable:$true] %s3206_s8 }
  0x83   : > { %s3208_s11 = scalar_lea.hbm %s3207_s8, 16  ;;  %p3214_p10 = scmp.lt.s32.totalorder %s3207_s8, %s4301_s28 }
  0x84   : > { %p3209_p5 = scmp.ne.s32.totalorder %s3207_s8, %s3208_s11  ;;  %p3215_p6 = scmp.lt.s32.totalorder %s3213_s7, %s3208_s11 }
  0x86   : > { %p3211_p1 = pnand %p3209_p5, %p3015_p9  ;;  %p3216_p11 = por %p3215_p6, %p3214_p10 }
  0x88   : > { %p3212_p8 = pneg %p3211_p1 }
  0x8a   : > { %p3217_p12 = pnand %p3216_p11, %p3212_p8 }
  0x8c   : > { %3220 = shalt.err (!%p3217_p12)
}
  0x8d   : > { %s4302_s9 = smov 8   ;;  %s4303_s2 = smov 128  }
  0x8e   : > { %2746 = dma.hbm_to_vmem [thread:$0]  (!%p3599_p7), %s704_s6, 256, %s3631_s12, %s3612_s29, %s4303_s2, %s4303_s2, %s4302_s9  }
  0x8f   : > { %s727_s5 = scalar_lea.vmem [#allocation11], %s3594_s22  ;;  %s4304_s23 = sand.u32 1, %s3368_s18  }
  0x90   : > { %s735_s26 = sshll.u32 %s727_s5, 4  ;;  %s724_s30 = scalar_lea.sflag [#allocation12], %s4304_s23  ;;  %s736_s26 = int_to_ptr.vmem [resolvable:$true] %s735_s26 }
  0x91   : > { %s3236_s0 = sshra.s32 %s734_s27, 4  ;;  %s3243_s10 = scalar_lea.hbm %s4226_s4, 16  ;;  %s3237_s0 = int_to_ptr.hbm [resolvable:$true] %s3236_s0 }
  0x92   : > { %s3238_s1 = scalar_lea.hbm %s3237_s0, 8  ;;  %p3244_p8 = scmp.lt.s32.totalorder %s3237_s0, %s4226_s4 }
  0x93   : > { %p3239_p2 = scmp.ne.s32.totalorder %s3237_s0, %s3238_s1  ;;  %p3245_p10 = scmp.lt.s32.totalorder %s3243_s10, %s3238_s1 }
  0x95   : > { %p3241_p5 = pnand %p3239_p2, %p3015_p9  ;;  %p3246_p6 = por %p3245_p10, %p3244_p8 }
  0x97   : > { %p3242_p1 = pneg %p3241_p5 }
  0x99   : > { %p3247_p11 = pnand %p3246_p6, %p3242_p1 }
  0x9b   : > { %3250 = shalt.err (!%p3247_p11)
}
  0x9c   : > { %2749 = dma.hbm_to_vmem [thread:$0]  (!%p3599_p7), %s734_s27, 128, %s736_s26, %s724_s30  }
  0x9d   : > { %744 = sbr.rel (%p3524_p3) target bundleno = 2448 (0x990), region = 96  ;;  %s3727_s22 = sand.u32 (!%p3524_p3), 1, %s3360_s21  }
  0x9e   : > { %s3730_s6 = sshll.u32 (!%p3524_p3), %s3727_s22, 3  ;;  %s747_s7 = scalar_lea.sflag (!%p3524_p3), [#allocation4], %s3727_s22 }
  0x9f   : > { %s750_s16 = scalar_lea.vmem (!%p3524_p3), [#allocation3], %s3730_s6 }
  0xa2   : > { %3311 = dma.done.wait (%p3577_p13), %s747_s7, 128  }
  0xa3   : > { %3313 = vsyncadd (%p3577_p13), %s747_s7, 4294967168  ;;  %s4306_s3 = sld [smem:[#allocation42_spill]]  ;;  %s760_s20 = scalar_lea.vmem [#allocation8], %s3730_s6 }
  0xa9   : > { %s756_s25 = sand.u32 1, %s4306_s3  }
  0xaa   : > { %s757_s27 = scalar_lea.sflag [#allocation9], %s756_s25 }
  0xab   : > { %3315 = dma.done.wait (%p3577_p13), %s757_s27, 384  }
  0xac   : > { %3317 = vsyncadd (%p3577_p13), %s757_s27, 4294966912  ;;  %s2493_s9 = sshll.u32 %s3727_s22, 4  ;;  %s777_s5 = scalar_lea.sflag [#allocation12], %s756_s25 }
  0xad   : > { %s3745_s2 = scalar_lea.vmem [#allocation10], %s2493_s9  ;;  %s780_s26 = scalar_lea.vmem [#allocation11], %s3730_s6 }
  0xae   : > { %3319 = dma.done.wait (%p3577_p13), %s777_s5, 128  }
  0xaf   : > { %3321 = vsyncadd (%p3577_p13), %s777_s5, 4294967168  ;;  %p4307_p3 = scmp.eq.s32.totalorder %s4306_s3, 0 }
  0xb1   : > { %3323 = dma.done.wait (%p4307_p3), [#allocation12], 128   ;;  %p4308_p7 = pmov %p4307_p3 }
  0xb2   : > { %p4309_p9 = pmov %p4307_p3 }
  0xb3   : > { %3325 = vsyncadd (%p4308_p7), [#allocation12], 4294967168 }
  0xb4   : > { %3327 = dma.done.wait (%p4309_p9), [#allocation15], 272   ;;  %p4310_p12 = pmov %p4307_p3 }
  0xb5   : > { %p4311_p2 = pmov %p4307_p3 }
  0xb6   : > { %3329 = vsyncadd (%p4310_p12), [#allocation15], 4294967024 }
  0xb7   : > { %3331 = dma.done.wait (%p4311_p2), [#allocation18], 272   ;;  %p4312_p5 = pmov %p4311_p2 }
  0xb8   : > { %p4313_p13 = pmov %p4311_p2 }
  0xb9   : > { %3333 = vsyncadd (%p4312_p5), [#allocation18], 4294967024 }
  0xba   : > { %3335 = dma.done.wait (%p4313_p13), [#allocation21], 208   ;;  %p4314_p1 = pmov %p4311_p2 }
  0xbc   : > { %3337 = vsyncadd (%p4314_p1), [#allocation21], 4294967088  ;;  %p4315_p8 = pmov %p4314_p1 }
  0xbd   : > { %p4316_p10 = pmov %p4314_p1 }
  0xbe   : > { %3339 = dma.done.wait (%p4315_p8), [#allocation6], 64  }
  0xbf   : > { %3341 = vsyncadd (%p4316_p10), [#allocation6], 4294967232  ;;  %p4317_p6 = pmov %p4314_p1 }
  0xc0   : > { %p4318_p11 = pmov %p4314_p1 }
  0xc1   : > { %3343 = dma.done.wait (%p4317_p6), [#allocation7], 64  }
  0xc2   : > { %3345 = vsyncadd (%p4318_p11), [#allocation7], 4294967232  ;;  %p4319_p3 = pmov %p4314_p1 }
  0xc3   : > { %p4320_p7 = pmov %p4314_p1 }
  0xc4   : > { %3347 = dma.done.wait (%p4319_p3), [#allocation26], 32  }
  0xc5   : > { %3349 = vsyncadd (%p4320_p7), [#allocation26], 4294967264 }
  0xc6   : > { %841 = sfence }
  0xc7   : > { %v924_v0 = vld [vmem:[#allocation13] sm:$0xff]  ;;  %vm932_vm0 = vcmask 64512   ;;  %v917_v2 = vld [vmem:[%s750_s16] sm:$0xff]  ;;  %v2845_v6 = vld [vmem:[#allocation14] ss:$0 sm:$0xff]  ;;  %vm983_vm1 = vcmask 130048  }
  0xc8   : > { %v918_v1 = vld [vmem:[%s760_s20] sm:$0xff]  ;;  %951 = vmatpush.msra.mxu0 %v924_v0  ;;  %v927_v4 = vld [vmem:[#allocation16 + $0x8] sm:$0xff]  ;;  %p912_p9 = scmp.lt.s32.totalorder %s4306_s3, 1  ;;  %s4321_s8 = sld [smem:[#allocation51_spill]]  ;;  %v2846_v15 = vld [vmem:[#allocation17] ss:$0 sm:$0xff] }
  0xc9   : > { %2509 = vmatmul.msk.f32.vlgmr.msra.gmra.mxu0 %vm932_vm0, %v918_v1  ;;  %1001 = vmatpush.msra.mxu2 %v927_v4  ;;  %v926_v5 = vld [vmem:[#allocation16] sm:$0xff]  ;;  %v929_v14 = vld [vmem:[#allocation19] sm:$0xff]  ;;  %s4322_s12 = sld [smem:[#allocation59_spill]]  ;;  %s3385_s20 = smov 96   ;;  %v1617_v54 = vld [vmem:[#allocation22 + $0x4] sm:$0xf] }
  0xca   : > { %s913_s23 = scalar_select %p912_p9, %s4306_s3, 1  ;;  %v930_v13 = vld [vmem:[#allocation19 + $0x8] sm:$0xff]  ;;  %v1309_v35 = vld [vmem:[#allocation22] sm:$0xf]  ;;  %v2847_v57 = vld [vmem:[#allocation20] ss:$0 sm:$0xff] }
  0xcb   : > { %1002 = vmatpush.msra.mxu2 %v926_v5  ;;  %1048 = vmatpush.msrb.mxu0 %v930_v13  ;;  %v3801_v21 = vld [vmem:[%s3745_s2] sm:$0xff]  ;;  %v3806_v22 = vld [vmem:[%s3745_s2 + $0x8] sm:$0xff]  ;;  %s4323_s16 = sld [smem:[#allocation58_spill]]  ;;  %s3386_s9 = smov 112  }
  0xcc   : > { %s2648_s30 = sshll.u32 %s913_s23, 4  ;;  %s3387_s2 = smov 80  }
  0xcd   : > { %1049 = vmatpush.msrb.mxu0 %v929_v14  ;;  %s3972_s27 = sld [smem:[#allocation23 + $0x2]] }
  0xce   : > { %s916_s11 = scalar_lea.vmem %s4321_s8, %s2648_s30  ;;  %s3982_s5 = sld [smem:[#allocation23]] }
  0xcf   : > { %v921_v11 = vld [vmem:[%s916_s11] sm:$0xff]  ;;  %v922_v12 = vld [vmem:[%s916_s11 + $0x8] sm:$0xff]  ;;  %1158 = vmatpush.msra.mxu0 %v927_v4  ;;  %s3984_s23 = sld [smem:[#allocation24]] }
  0xd0   : > { %v1285_v32 = vld [vmem:[%s4322_s12] sm:$0xf]  ;;  %v2565_v51 = vld [vmem:[%s4322_s12 + $0x4] sm:$0xf]  ;;  %v2606_v1 = vld [vmem:[%s4322_s12 + $0x8] sm:$0xf] }
  0xd1   : > { %1159 = vmatpush.msra.mxu0 %v926_v5  ;;  %v1334_v33 = vld [vmem:[%s4323_s16 + $0x8] sm:$0xff]  ;;  %v1333_v34 = vld [vmem:[%s4323_s16] sm:$0xff]  ;;  %v2572_v45 = vld [vmem:[%s4323_s16 + $0x18] sm:$0xff]  ;;  %s3988_s30 = sld [smem:[#allocation27 + $0x5]] }
  0xd2   : > { %v2571_v46 = vld [vmem:[%s4323_s16 + $0x10] sm:$0xff]  ;;  %s3994_s0 = sld [smem:[#allocation27 + $0x3]] }
  0xd3   : > { %s3998_s1 = sld [smem:[#allocation24 + $0x1]] }
  0xd4   : > { %s4002_s8 = sld [smem:[#allocation25]] }
  0xd5   : > { %s4009_s11 = sld [smem:[#allocation27 + $0x4]] }
  0xd6   : > { %s4018_s10 = sld [smem:[#allocation24 + $0x2]] }
  0xd7   : > { %s4024_s19 = sld [smem:[#allocation23 + $0x3]] }
  0xd8   : > { %s4033_s29 = sld [smem:[#allocation23 + $0x81]] }
  0xd9   : > { %s4042_s7 = sld [smem:[#allocation24 + $0x3]] }
  0xda   : > { %s4051_s25 = sld [smem:[#allocation24 + $0x80]] }
 0x146   : > { %v953_v3 = vpop.f32.mrf.mxu0 }
 0x147   : > { %977 = vmatpush.msra.mxu1 %v953_v3  ;;  %v2612_v3 = vld [vmem:[%s4323_s16 + $0x20] sm:$0xff] }
 0x148   : > { %2510 = vmatmul.msk.f32.vlgmr.msra.gmra.mxu1 %vm932_vm0, %v917_v2 }
 0x1c5   : > { %v979_v7 = vpop.f32.mrf.mxu1 }
 0x1c6   : > { %v980_v8 = vadd.f32 %v2845_v6, %v979_v7  ;;  %v3388_v7 = vmov 2  }
 0x1c7   : > { %2834 = vset.pattern.permute.xlu2 %v3388_v7 }
 0x1c8   : > { %v3784_v9 = vmax.f32 %v980_v8, 0.0  ;;  %v3389_v8 = vmov 1  }
 0x1c9   : > { %2833 = vset.pattern.permute.xlu1 %v3389_v8 }
 0x1ca   : > { %2511 = vmatmul.msk.f32.vlgmr.msra.gmra.mxu2 %vm983_vm1, %v3784_v9 }
 0x24d   : > { %v1004_v10 = vpop.f32.mrf.mxu2 }
 0x24e   : > { %1025 = vmatpush.msra.mxu3 %v1004_v10  ;;  %v1935_v10 = vld [vmem:[#allocation22 + $0x8] sm:$0xf] }
 0x24f   : > { %2512 = vmatmul.msk.f32.vlgmr.msra.gmra.mxu3 %vm932_vm0, %v917_v2 }
 0x250   : > { %1099 = vmatpush.msrb.mxu3 %v924_v0 }
 0x252   : > { %1212 = vmatpush.msra.mxu3 %v930_v13 }
 0x254   : > { %1213 = vmatpush.msra.mxu3 %v929_v14 }
 0x257   : > { %2515 = vmatmul.msk.f32.vlgmr.msrb.gmra.mxu3 %vm932_vm0, %v921_v11 }
 0x25f   : > { %2516 = vmatmul.msk.f32.gmra.mxu3 %vm932_vm0, %v922_v12 }
 0x2d2   : > { %v1027_v16 = vpop.f32.mrf.mxu3 }
 0x2d3   : > { %v1028_v17 = vadd.f32 %v2846_v15, %v1027_v16 }
 0x2d5   : > { %v3796_v18 = vmax.f32 %v1028_v17, 0.0 }
 0x2d7   : > { %2513 = vmatmul.msk.f32.vlgmr.msrb.gmra.mxu0 %vm983_vm1, %v3796_v18 }
 0x2da   : > { %v1101_v19 = vpop.f32.mrf.mxu3 }
 0x2e2   : > { %v1104_v20 = vpop.f32.mrf.mxu3 }
 0x2e3   : > { %1127 = vmatpush.msrb.mxu2 %v1104_v20 }
 0x2e5   : > { %1128 = vmatpush.msrb.mxu2 %v1101_v19 }
 0x2e6   : > { %2517 = vmatmul.msk.f32.vlgmr.msrb.gmra.mxu2 %vm983_vm1, %v3801_v21 }
 0x2ee   : > { %2518 = vmatmul.msk.f32.gmra.mxu2 %vm983_vm1, %v3806_v22 }
 0x354   : > { %v1051_v23 = vpop.f32.mrf.mxu0 }
 0x355   : > { %1072 = vmatpush.msrb.mxu1 %v1051_v23 }
 0x356   : > { %2514 = vmatmul.msk.f32.vlgmr.msrb.gmra.mxu1 %vm932_vm0, %v917_v2  ;;  %v2613_v2 = vld [vmem:[%s4323_s16 + $0x28] sm:$0xff] }
 0x369   : > { %v1130_v24 = vpop.f32.mrf.mxu2 }
 0x36a   : > { %v1131_v25 = vadd.f32 %v2845_v6, %v1130_v24 }
 0x36c   : > { %v3811_v26 = vmax.f32 %v1131_v25, 0.0 }
 0x36e   : > { %2519 = vmatmul.msk.f32.vlgmr.msra.gmra.mxu0 %vm983_vm1, %v3811_v26 }
 0x371   : > { %v1133_v27 = vpop.f32.mrf.mxu2 }
 0x372   : > { %v1134_v28 = vadd.f32 %v2845_v6, %v1133_v27 }
 0x374   : > { %v3815_v29 = vmax.f32 %v1134_v28, 0.0 }
 0x376   : > { %2520 = vmatmul.msk.f32.gmra.mxu0 %vm983_vm1, %v3815_v29  ;;  %2538 = vmatpush.xpose.msk.msrb.mxu3 %vm983_vm1, %v3815_v29 }
 0x377   : > { %2527 = vmatpush.xpose.msk.msrb.mxu0 %vm983_vm1, %v3815_v29 }
 0x37a   : > { %2539 = vmatpush.xpose.msk.msrb.mxu3 %vm983_vm1, %v3811_v26 }
 0x37b   : > { %2528 = vmatpush.xpose.msk.msrb.mxu0 %vm983_vm1, %v3811_v26 }
 0x37e   : > { %2529 = vmatmul.msk.f32.vlgmr.msrb.gmra.mxu0 %vm983_vm1, %v3784_v9 }
 0x37f   : > { %2533 = vmatpush.xpose.msk.msra.mxu0 %vm983_vm1, %v3815_v29 }
 0x383   : > { %2534 = vmatpush.xpose.msk.msra.mxu0 %vm983_vm1, %v3811_v26 }
 0x386   : > { %2535 = vmatmul.msk.f32.vlgmr.msra.gmra.mxu0 %vm983_vm1, %v1309_v35 }
 0x387   : > { %2549 = vmatpush.xpose.msk.msrb.mxu0 %vm983_vm1, %v3815_v29 }
 0x38b   : > { %2550 = vmatpush.xpose.msk.msrb.mxu0 %vm983_vm1, %v3811_v26 }
 0x3d3   : > { %v3860_v36 = vpop.f32.mrf.mxu1 }
 0x3d4   : > { %v1075_v63 = vadd.f32 %v2847_v57, %v3860_v36 }
 0x3d6   : > { %v1077_v0 = vmax.f32 %v1075_v63, 0.0 }
 0x3eb   : > { %v1161_v30 = vpop.f32.mrf.mxu0 }
 0x3f3   : > { %v1164_v31 = vpop.f32.mrf.mxu0 }
 0x3f4   : > { %1181 = vmatpush.msra.mxu1 %v1164_v31 }
 0x3f6   : > { %1182 = vmatpush.msra.mxu1 %v1161_v30 }
 0x3f7   : > { %2521 = vmatmul.msk.f32.vlgmr.msra.gmra.mxu1 %vm983_vm1, %v3801_v21 }
 0x3f8   : > { %2531 = vmatpush.xpose.msk.msrb.mxu1 %vm983_vm1, %v1285_v32 }
 0x3fb   : > { %v1263_v19 = vpop.f32.mrf.mxu0 }
 0x3fc   : > { %1349 = vmatpush.msra.mxu1 %v1334_v33  ;;  %v2530_v20 = vmul.f32 -1.442695, %v1263_v19  ;;  %v1448_v19 = vstv %s3988_s30  ;;  %s2593_s30 = sld [smem:[#allocation24 + $0x83]] }
 0x3fe   : > { %1350 = vmatpush.msra.mxu1 %v1333_v34  ;;  %2848 = vpow2.f32 %v2530_v20  ;;  %v1362_v20 = vstv %s3994_s0  ;;  %s2599_s0 = sld [smem:[#allocation24 + $0x84]] }
 0x3ff   : > { %2522 = vmatmul.msk.f32.gmra.mxu1 %vm983_vm1, %v3806_v22 }
 0x403   : > { %v3966_v30 = vpop.f32.mrf.mxu0 }
 0x404   : > { %v2849_v23 = vpop.eup %2848 }
 0x405   : > { %v1269_v25 = vadd.f32 1.0, %v2849_v23 }
 0x407   : > { %2532 = vmatmul.msk.f32.vlgmr.msrb.gmra.mxu1 %vm983_vm1, %v3784_v9  ;;  %vm1275_vm3 = vweird.f32 %v1269_v25 }
 0x408   : > { %2555 = vmatpush.xpose.msk.msrb.mxu1 %vm983_vm1, %v3815_v29 }
 0x40c   : > { %2556 = vmatpush.xpose.msk.msrb.mxu1 %vm983_vm1, %v3811_v26 }
 0x40f   : > { %2536 = vmatmul.msk.f32.vlgmr.msra.gmra.mxu1 %vm983_vm1, %v3784_v9  ;;  %v3390_v9 = vmov 0  }
 0x410   : > { %1658 = vmatpush.msra.mxu1 %v2572_v45  ;;  %2832 = vset.pattern.permute.xlu0 %v3390_v9 }
 0x412   : > { %1659 = vmatpush.msra.mxu1 %v2571_v46  ;;  %v1748_v46 = vstv %s4033_s29  ;;  %s4139_s29 = sld [smem:[#allocation25 + $0x2]] }
 0x474   : > { %v1184_v37 = vpop.f32.mrf.mxu1 }
 0x475   : > { %v1185_v38 = vadd.f32 %v2846_v15, %v1184_v37 }
 0x477   : > { %v1190_v39 = vmax.f32 %v1185_v38, 0.0 }
 0x479   : > { %2523 = vmatmul.msk.f32.vlgmr.msra.gmra.mxu3 %vm983_vm1, %v1190_v39 }
 0x47c   : > { %v1187_v40 = vpop.f32.mrf.mxu1 }
 0x47d   : > { %v1188_v41 = vadd.f32 %v2846_v15, %v1187_v40  ;;  %v3391_v15 = vmov 3  }
 0x47f   : > { %v1191_v42 = vmax.f32 %v1188_v41, 0.0  ;;  %v1281_v41 = vand.u32 2147483648, %v1269_v25 }
 0x481   : > { %2524 = vmatmul.msk.f32.gmra.mxu3 %vm983_vm1, %v1191_v42  ;;  %2568 = vmatpush.xpose.msk.msra.mxu0 %vm983_vm1, %v1191_v42 }
 0x482   : > { %2561 = vmatpush.xpose.msk.msra.mxu3 %vm983_vm1, %v1191_v42 }
 0x484   : > { %v3866_v43 = vpop.f32.mrf.mxu1 }
 0x485   : > { %2569 = vmatpush.xpose.msk.msra.mxu0 %vm983_vm1, %v1190_v39 }
 0x486   : > { %2562 = vmatpush.xpose.msk.msra.mxu3 %vm983_vm1, %v1190_v39 }
 0x48c   : > { %v1352_v44 = vpop.f32.mrf.mxu1 }
 0x48d   : > { %1455 = vrot.lane.b32.xlu2 %v1352_v44, %s3385_s20  ;;  %1412 = vrot.lane.b32.xlu1 %v1352_v44, %s3386_s9 }
 0x48e   : > { %1498 = vrot.lane.b32.xlu0 %v1352_v44, %s3387_s2  ;;  %2540 = vmatmul.msk.f32.vlgmr.msrb.gmra.mxu3 %vm983_vm1, %v1352_v44  ;;  %v1479_v44 = vperm.slane %v3966_v30, 2 }
 0x48f   : > { %2577 = vmatpush.xpose.msk.msrb.mxu3 %vm983_vm1, %v1191_v42 }
 0x493   : > { %2578 = vmatpush.xpose.msk.msrb.mxu3 %vm983_vm1, %v1190_v39 }
 0x496   : > { %2563 = vmatmul.msk.f32.vlgmr.msra.gmra.mxu3 %vm983_vm1, %v3796_v18 }
 0x4e7   : > { %v1456_v47 = vpop.permute.xlu2 %1455 }
 0x4e8   : > { %2551 = vmatmul.msk.f32.vlgmr.msrb.gmra.mxu0 %vm983_vm1, %v1456_v47 }
 0x4e9   : > { %2589 = vmatpush.xpose.msk.msrb.mxu0 %vm983_vm1, %v1191_v42 }
 0x4ed   : > { %2590 = vmatpush.xpose.msk.msrb.mxu0 %vm983_vm1, %v1190_v39 }
 0x4f0   : > { %2570 = vmatmul.msk.f32.vlgmr.msra.gmra.mxu0 %vm983_vm1, %v1617_v54 }
 0x4fc   : > { %v1215_v48 = vpop.f32.mrf.mxu3 }
 0x4ff   : > { %v1413_v52 = vpop.permute.xlu1 %1412 }
 0x500   : > { %v1499_v49 = vpop.permute.xlu0 %1498 }
 0x501   : > { %2557 = vmatmul.msk.f32.vlgmr.msrb.gmra.mxu1 %vm983_vm1, %v1499_v49 }
 0x502   : > { %2595 = vmatpush.xpose.msk.msrb.mxu1 %vm983_vm1, %v1191_v42 }
 0x504   : > { %v1218_v50 = vpop.f32.mrf.mxu3 }
 0x505   : > { %1235 = vmatpush.msra.mxu2 %v1218_v50  ;;  %v1282_v50 = vor.u32 1.1754944e-38, %v1281_v41  ;;  %v1525_v41 = vstv %s4024_s19  ;;  %s4137_s19 = sld [smem:[#allocation23 + $0x101]] }
 0x506   : > { %2596 = vmatpush.xpose.msk.msrb.mxu1 %vm983_vm1, %v1190_v39 }
 0x507   : > { %1236 = vmatpush.msra.mxu2 %v1215_v48 }
 0x508   : > { %2525 = vmatmul.msk.f32.vlgmr.msra.gmra.mxu2 %vm983_vm1, %v3801_v21 }
 0x509   : > { %2543 = vmatpush.xpose.msk.msrb.mxu2 %vm983_vm1, %v3815_v29  ;;  %2573 = vmatmul.msk.f32.vlgmr.msra.gmra.mxu1 %vm983_vm1, %v3796_v18 }
 0x50a   : > { %1976 = vmatpush.msra.mxu1 %v2613_v2 }
 0x50c   : > { %1977 = vmatpush.msra.mxu1 %v2612_v3 }
 0x50d   : > { %2544 = vmatpush.xpose.msk.msrb.mxu2 %vm983_vm1, %v3811_v26 }
 0x510   : > { %2526 = vmatmul.msk.f32.gmra.mxu2 %vm983_vm1, %v3806_v22 }
 0x511   : > { %2566 = vmatpush.xpose.msk.msra.mxu2 %vm983_vm1, %v2565_v51  ;;  %v1436_v51 = vperm.slane %v3966_v30, 1 }
 0x518   : > { %2545 = vmatmul.msk.f32.vlgmr.msrb.gmra.mxu2 %vm983_vm1, %v1413_v52 }
 0x519   : > { %2583 = vmatpush.xpose.msk.msrb.mxu2 %vm983_vm1, %v1191_v42  ;;  %v1279_v42 = vand.u32 2147483647, %v1269_v25 }
 0x51b   : > { %vm1280_vm5 = vcmp.eq.f32.partialorder %v1279_v42, 8.507059e+37 }
 0x51d   : > { %2584 = vmatpush.xpose.msk.msrb.mxu2 %vm983_vm1, %v1190_v39 }
 0x520   : > { %2567 = vmatmul.msk.f32.vlgmr.msra.gmra.mxu2 %vm983_vm1, %v3796_v18  ;;  %v3960_v18 = vpop.f32.mrf.mxu3 }
 0x521   : > { %2607 = vmatpush.xpose.msk.msra.mxu2 %vm983_vm1, %v2606_v1 }
 0x528   : > { %v1569_v21 = vpop.f32.mrf.mxu3 }
 0x529   : > { %v2564_v22 = vmul.f32 -1.442695, %v1569_v21 }
 0x52b   : > { %2850 = vpow2.f32 %v2564_v22 }
 0x52c   : > { %2852 = vrcp.f32 %v1269_v25 }
 0x531   : > { %v2851_v26 = vpop.eup %2850 }
 0x532   : > { %v3963_v27 = vadd.f32 1.0, %v2851_v26  ;;  %v2853_v28 = vpop.eup %2852  ;;  %v1359_v26 = vstv %s4002_s8  ;;  %s4131_s8 = sld [smem:[#allocation23 + $0x102]] }
 0x533   : > { %v1271_v29 = vmul.f32 %v2853_v28, %v1269_v25  ;;  %vm1276_vm2 = vweird.f32 %v2853_v28  ;;  %v1401_v25 = vstv %s3998_s1  ;;  %s2621_s1 = sld [smem:[#allocation23 + $0x100]] }
 0x534   : > { %2854 = vrcp.f32 %v3963_v27  ;;  %vm3990_vm4 = vmor %vm1275_vm3, %vm1276_vm2  ;;  %v1587_v49 = vand.u32 2147483648, %v3963_v27  ;;  %vm1581_vm7 = vweird.f32 %v3963_v27  ;;  %v1585_v63 = vand.u32 2147483647, %v3963_v27 }
 0x535   : > { %v1272_v32 = vsub.f32 1.0, %v1271_v29 }
 0x536   : > { %vm4060_vm9 = vcmp.eq.f32.partialorder %v1585_v63, 8.507059e+37 }
 0x537   : > { %v1273_v35 = vmul.f32 %v2853_v28, %v1272_v32  ;;  %v1405_v32 = vstv %s4009_s11  ;;  %s4133_s11 = sld [smem:[#allocation24 + $0x100]] }
 0x539   : > { %v1274_v40 = vadd.f32 %v2853_v28, %v1273_v35 }
 0x53a   : > { %v3968_v31 = vpop.eup %2854 }
 0x53b   : > { %v1577_v33 = vmul.f32 %v3968_v31, %v3963_v27  ;;  %v1278_v47 = vsel %vm3990_vm4, %v2853_v28, %v1274_v40  ;;  %vm1582_vm6 = vweird.f32 %v3968_v31 }
 0x53c   : > { %vm4028_vm8 = vmor %vm1581_vm7, %vm1582_vm6 }
 0x53d   : > { %v1578_v36 = vsub.f32 1.0, %v1577_v33 }
 0x565   : > { %v1476_v38 = vpop.f32.mrf.mxu0 }
 0x57e   : > { %v3909_v53 = vpop.f32.mrf.mxu1 }
 0x586   : > { %v1661_v55 = vpop.f32.mrf.mxu1 }
 0x587   : > { %1764 = vrot.lane.b32.xlu2 %v1661_v55, %s3385_s20  ;;  %1721 = vrot.lane.b32.xlu1 %v1661_v55, %s3386_s9 }
 0x588   : > { %1807 = vrot.lane.b32.xlu0 %v1661_v55, %s3387_s2  ;;  %2579 = vmatmul.msk.f32.vlgmr.msrb.gmra.mxu3 %vm983_vm1, %v1661_v55 }
 0x58b   : > { %v1238_v56 = vpop.f32.mrf.mxu2 }
 0x58c   : > { %v1239_v59 = vadd.f32 %v2847_v57, %v1238_v56  ;;  %v1393_v56 = vperm.slane %v3966_v30, 0 }
 0x58e   : > { %v1244_v62 = vmax.f32 %v1239_v59, 0.0  ;;  %v1482_v59 = vstv %s3972_s27  ;;  %s4056_s27 = sld [smem:[#allocation23 + $0x83]] }
 0x593   : > { %v1241_v58 = vpop.f32.mrf.mxu2 }
 0x594   : > { %v1242_v60 = vadd.f32 %v2847_v57, %v1241_v58  ;;  %v4012_v57 = vpop.f32.mrf.mxu0  ;;  %v4014_v58 = vsel %vm1280_vm5, %v1282_v50, %v1278_v47 }
 0x596   : > { %v1245_v61 = vmax.f32 %v1242_v60, 0.0 }
 0x598   : > { %2602 = vmatpush.xpose.msk.msra.mxu3 %vm983_vm1, %v1245_v61  ;;  %2609 = vmatpush.xpose.msk.msra.mxu0 %vm983_vm1, %v1245_v61 }
 0x59b   : > { %v3948_v12 = vpop.f32.mrf.mxu2 }
 0x59c   : > { %2603 = vmatpush.xpose.msk.msra.mxu3 %vm983_vm1, %v1244_v62  ;;  %2610 = vmatpush.xpose.msk.msra.mxu0 %vm983_vm1, %v1244_v62 }
 0x59f   : > { %2604 = vmatmul.msk.f32.vlgmr.msra.gmra.mxu3 %vm983_vm1, %v1077_v0 }
 0x5a0   : > { %2618 = vmatpush.xpose.msk.msrb.mxu3 %vm983_vm1, %v1245_v61 }
 0x5a3   : > { %v1613_v14 = vpop.f32.mrf.mxu2 }
 0x5a4   : > { %2619 = vmatpush.xpose.msk.msrb.mxu3 %vm983_vm1, %v1244_v62 }
 0x5e1   : > { %v1765_v4 = vpop.permute.xlu2 %1764 }
 0x5e2   : > { %2591 = vmatmul.msk.f32.vlgmr.msrb.gmra.mxu0 %vm983_vm1, %v1765_v4 }
 0x5e3   : > { %2630 = vmatpush.xpose.msk.msrb.mxu0 %vm983_vm1, %v1245_v61 }
 0x5e7   : > { %2631 = vmatpush.xpose.msk.msrb.mxu0 %vm983_vm1, %v1244_v62 }
 0x5ea   : > { %2611 = vmatmul.msk.f32.vlgmr.msra.gmra.mxu0 %vm983_vm1, %v1935_v10  ;;  %v4040_v10 = vor.u32 1.1754944e-38, %v1587_v49 }
 0x5f9   : > { %v1722_v5 = vpop.permute.xlu1 %1721 }
 0x5fa   : > { %v1808_v6 = vpop.permute.xlu0 %1807  ;;  %2585 = vmatmul.msk.f32.vlgmr.msrb.gmra.mxu2 %vm983_vm1, %v1722_v5 }
 0x5fb   : > { %2597 = vmatmul.msk.f32.vlgmr.msrb.gmra.mxu1 %vm983_vm1, %v1808_v6  ;;  %2624 = vmatpush.xpose.msk.msrb.mxu2 %vm983_vm1, %v1245_v61  ;;  %v1396_v6 = vstv %s3982_s5  ;;  %s4085_s5 = sld [smem:[#allocation23 + $0x82]] }
 0x5fc   : > { %2636 = vmatpush.xpose.msk.msrb.mxu1 %vm983_vm1, %v1245_v61 }
 0x5ff   : > { %2625 = vmatpush.xpose.msk.msrb.mxu2 %vm983_vm1, %v1244_v62 }
 0x600   : > { %2637 = vmatpush.xpose.msk.msrb.mxu1 %vm983_vm1, %v1244_v62 }
 0x602   : > { %2608 = vmatmul.msk.f32.vlgmr.msra.gmra.mxu2 %vm983_vm1, %v1077_v0 }
 0x603   : > { %2614 = vmatmul.msk.f32.vlgmr.msra.gmra.mxu1 %vm983_vm1, %v1077_v0  ;;  %v1702_v0 = vperm.slane %v4012_v57, 0 }
 0x60b   : > { %v1699_v62 = vpop.f32.mrf.mxu3 }
 0x678   : > { %v3946_v11 = vpop.f32.mrf.mxu1 }
 0x67d   : > { %v3957_v16 = vpop.f32.mrf.mxu2 }
 0x680   : > { %v1979_v13 = vpop.f32.mrf.mxu1 }
 0x681   : > { %2125 = vrot.lane.b32.xlu2 %v1979_v13, %s3387_s2  ;;  %2082 = vrot.lane.b32.xlu1 %v1979_v13, %s3385_s20  ;;  %s3974_s20 = sld [smem:[#allocation27 + $0x6]] }
 0x682   : > { %2039 = vrot.lane.b32.xlu0 %v1979_v13, %s3386_s9  ;;  %2620 = vmatmul.msk.f32.vlgmr.msrb.gmra.mxu3 %vm983_vm1, %v1979_v13  ;;  %s3976_s9 = sld [smem:[#allocation23 + $0x80]] }
 0x683   : > { %s3979_s2 = sld [smem:[#allocation23 + $0x1]] }
 0x685   : > { %v1931_v17 = vpop.f32.mrf.mxu2 }
 0x687   : > { %v1491_v13 = vstv %s3974_s20  ;;  %s4072_s20 = sld [smem:[#allocation27 + $0x7]] }
 0x689   : > { %1452 = vperm.xlu2 %2834, %v3866_v43   ;;  %1409 = vperm.xlu1 %2833, %v3866_v43   ;;  %v1439_v1 = vstv %s3979_s2  ;;  %s4083_s2 = sld [smem:[#allocation24 + $0x81]] }
 0x68a   : > { %1367 = vperm.xlu0 %2832, %v3866_v43  }
 0x691   : > { %2836 = vset.pattern.permute.xlu2 %v3390_v9  ;;  %2835 = vset.pattern.permute.xlu1 %v3391_v15 }
 0x692   : > { %2837 = vset.pattern.permute.xlu0 %v3389_v8  ;;  %1495 = vperm.xlu1 %2835, %v3866_v43   ;;  %v1579_v43 = vmul.f32 %v3968_v31, %v1578_v36 }
 0x693   : > { %1718 = vperm.xlu0 %2837, %v1613_v14   ;;  %1676 = vperm.xlu2 %2836, %v1613_v14  }
 0x694   : > { %v4005_v54 = vadd.f32 %v3968_v31, %v1579_v43 }
 0x69a   : > { %2838 = vset.pattern.permute.xlu1 %v3388_v7 }
 0x69b   : > { %2842 = vset.pattern.permute.xlu0 %v3388_v7  ;;  %2839 = vset.pattern.permute.xlu2 %v3391_v15  ;;  %v1357_v7 = vstv %s3984_s23  ;;  %s4090_s23 = sld [smem:[#allocation24 + $0x82]] }
 0x69c   : > { %1761 = vperm.xlu1 %2838, %v1613_v14   ;;  %1804 = vperm.xlu2 %2839, %v1613_v14   ;;  %v1705_v14 = vstv %s3976_s9  ;;  %s4080_s9 = sld [smem:[#allocation25 + $0x1]] }
 0x69d   : > { %2079 = vperm.xlu0 %2842, %v1931_v17  }
 0x6a4   : > { %2840 = vset.pattern.permute.xlu1 %v3390_v9  ;;  %2841 = vset.pattern.permute.xlu2 %v3389_v8  ;;  %v1584_v9 = vsel %vm4028_vm8, %v3968_v31, %v4005_v54 }
 0x6a5   : > { %2036 = vperm.xlu2 %2841, %v1931_v17   ;;  %1994 = vperm.xlu1 %2840, %v1931_v17  }
 0x6a6   : > { %2844 = vset.pattern.permute.xlu0 %v3391_v15 }
 0x6ad   : > { %2843 = vset.pattern.permute.xlu1 %v3391_v15  ;;  %v1831_v15 = vperm.slane %v4012_v57, 3 }
 0x6ae   : > { %2122 = vperm.xlu1 %2843, %v1931_v17  }
 0x6db   : > { %v2126_v24 = vpop.permute.xlu2 %2125 }
 0x6dc   : > { %2638 = vmatmul.msk.f32.vlgmr.msrb.gmra.mxu1 %vm983_vm1, %v2126_v24 }
 0x6e3   : > { %v1453_v34 = vpop.permute.xlu2 %1452 }
 0x6e4   : > { %v1477_v45 = vadd.f32 %v1476_v38, %v1453_v34  ;;  %v1522_v34 = vperm.slane %v3966_v30, 3  ;;  %v1745_v38 = vperm.slane %v4012_v57, 1 }
 0x6e6   : > { %v1480_v52 = vadd.f32 %v1479_v44, %v1477_v45 }
 0x6e8   : > { %v1483_v8 = vadd.f32 %v1482_v59, %v1480_v52 }
 0x6ea   : > { %v1484_v27 = vmax.f32 %v1483_v8, 0.0 }
 0x6ed   : > { %v1677_v48 = vpop.permute.xlu2 %1676 }
 0x6ee   : > { %v1700_v4 = vadd.f32 %v1699_v62, %v1677_v48  ;;  %v1485_v48 = vmul.f32 %v1484_v27, %v4014_v58  ;;  %v1834_v62 = vstv %s4056_s27  ;;  %s2634_s27 = sld [smem:[#allocation24 + $0x103]] }
 0x6f0   : > { %v1703_v23 = vadd.f32 %v1702_v0, %v1700_v4 }
 0x6f2   : > { %v1706_v44 = vadd.f32 %v1705_v14, %v1703_v23 }
 0x6f3   : > { %v2083_v37 = vpop.permute.xlu1 %2082 }
 0x6f4   : > { %v2040_v39 = vpop.permute.xlu0 %2039  ;;  %2632 = vmatmul.msk.f32.vlgmr.msrb.gmra.mxu0 %vm983_vm1, %v2083_v37 }
 0x6f5   : > { %2626 = vmatmul.msk.f32.vlgmr.msrb.gmra.mxu2 %vm983_vm1, %v2040_v39  ;;  %v1444_v39 = vstv %s4018_s10  ;;  %s4135_s10 = sld [smem:[#allocation23 + $0x103]] }
 0x6f6   : > { %v1805_v29 = vpop.permute.xlu2 %1804 }
 0x6f7   : > { %v1829_v45 = vadd.f32 %v3946_v11, %v1805_v29  ;;  %v1753_v29 = vstv %s4090_s23  ;;  %s2594_s23 = sld [smem:[#allocation27 + $0xb]] }
 0x6f9   : > { %v1832_v63 = vadd.f32 %v1831_v15, %v1829_v45 }
 0x6fb   : > { %v1410_v55 = vpop.permute.xlu1 %1409 }
 0x6fc   : > { %v1434_v60 = vadd.f32 %v3948_v12, %v1410_v55  ;;  %v1368_v61 = vpop.permute.xlu0 %1367  ;;  %v1487_v55 = vstv %s4042_s7  ;;  %s4141_s7 = sld [smem:[#allocation24 + $0x101]] }
 0x6fd   : > { %v1391_v2 = vadd.f32 %v3960_v18, %v1368_v61  ;;  %v4049_v18 = vld [vmem:[%s780_s26] sm:$0xff]  ;;  %s4066_s26 = sld [smem:[#allocation24 + $0x4]]  ;;  %v1707_v61 = vmax.f32 %v1706_v44, 0.0 }
 0x6fe   : > { %v1437_v5 = vadd.f32 %v1436_v51, %v1434_v60  ;;  %v1358_v22 = vmul.f32 %v1357_v7, %v4049_v18  ;;  %v1363_v36 = vmul.f32 %v1362_v20, %v4049_v18  ;;  %v1488_v7 = vmul.f32 %v1487_v55, %v1485_v48 }
 0x6ff   : > { %v1394_v12 = vadd.f32 %v1393_v56, %v1391_v2  ;;  %v1666_v56 = vstv %s4051_s25  ;;  %v1835_v20 = vadd.f32 %v1834_v62, %v1832_v63  ;;  %v2023_v63 = vstv %s2621_s1  ;;  %s2628_s25 = sld [smem:[#allocation24 + $0x102]] }
 0x700   : > { %v1440_v17 = vadd.f32 %v1439_v1, %v1437_v5  ;;  %v1360_v30 = vadd.f32 %v1359_v26, %v1358_v22  ;;  %v1492_v1 = vmul.f32 %v1491_v13, %v1485_v48  ;;  %v1788_v13 = vperm.slane %v4012_v57, 2  ;;  %v1887_v48 = vpop.f32.mrf.mxu3  ;;  %s2617_s1 = sld [smem:[#allocation27 + $0xd]] }
 0x701   : > { %v1397_v21 = vadd.f32 %v1396_v6, %v1394_v12  ;;  %v1589_v6 = vsel %vm4060_vm9, %v4040_v10, %v1584_v9  ;;  %v1534_v12 = vstv %s4072_s20  ;;  %v1667_v54 = vmul.f32 %v1666_v56, %v4049_v18  ;;  %s1537_s20 = sld [smem:[#allocation27]] }
 0x702   : > { %v1441_v24 = vmax.f32 %v1440_v17, 0.0  ;;  %v4104_v3 = vmul.f32 %v1707_v61, %v1589_v6  ;;  %v1668_v9 = vstv %s4080_s9  ;;  %s2576_s9 = sld [smem:[#allocation27 + $0x8]] }
 0x703   : > { %v1398_v33 = vmax.f32 %v1397_v21, 0.0  ;;  %v1530_v8 = vstv %s4066_s26  ;;  %v1669_v28 = vadd.f32 %v1668_v9, %v1667_v54  ;;  %s2640_s26 = sld [smem:[#allocation24 + $0x104]] }
 0x704   : > { %v1442_v35 = vmul.f32 %v1441_v24, %v4014_v58  ;;  %v1496_v37 = vpop.permute.xlu1 %1495  ;;  %v1710_v24 = vstv %s4083_s2  ;;  %s2582_s2 = sld [smem:[#allocation27 + $0x9]] }
 0x705   : > { %v1399_v40 = vmul.f32 %v1398_v33, %v4014_v58  ;;  %v1520_v42 = vadd.f32 %v3909_v53, %v1496_v37  ;;  %v1719_v43 = vpop.permute.xlu0 %1718  ;;  %v1836_v33 = vmax.f32 %v1835_v20, 0.0  ;;  %v2109_v20 = vstv %s4131_s8  ;;  %s2623_s8 = sld [smem:[#allocation27 + $0xe]] }
 0x706   : > { %v1743_v47 = vadd.f32 %v3957_v16, %v1719_v43  ;;  %v1449_v51 = vmul.f32 %v1448_v19, %v1442_v35  ;;  %v1445_v60 = vmul.f32 %v1444_v39, %v1442_v35  ;;  %v1785_v19 = vpop.f32.mrf.mxu0 }
 0x707   : > { %v1402_v49 = vmul.f32 %v1401_v25, %v1399_v40  ;;  %v1406_v50 = vmul.f32 %v1405_v32, %v1399_v40  ;;  %v1523_v53 = vadd.f32 %v1522_v34, %v1520_v42  ;;  %v1791_v25 = vstv %s4085_s5  ;;  %s2588_s5 = sld [smem:[#allocation27 + $0xa]] }
 0x708   : > { %v1746_v52 = vadd.f32 %v1745_v38, %v1743_v47  ;;  %v1711_v32 = vmul.f32 %v1710_v24, %v4104_v3  ;;  %v1796_v38 = vstv %s2593_s30  ;;  %v1839_v42 = vstv %s2599_s0  ;;  %s2600_s30 = sld [smem:[#allocation27 + $0xc]] }
 0x709   : > { %v1407_v11 = vadd.f32 %v1406_v50, %v1363_v36  ;;  %v1526_v16 = vadd.f32 %v1525_v41, %v1523_v53  ;;  %v1403_v59 = vadd.f32 %v1402_v49, %v1360_v30  ;;  %v4123_v41 = vmul.f32 %v1836_v33, %v1589_v6  ;;  %s2601_s0 = sld [smem:[#allocation27 + $0x1]] }
 0x70a   : > { %v1749_v0 = vadd.f32 %v1748_v46, %v1746_v52  ;;  %v1712_v40 = vadd.f32 %v1711_v32, %v1669_v28  ;;  %v2605_v49 = vmul.f32 -1.442695, %v1887_v48  ;;  %v1984_v24 = vstv %s4133_s11  ;;  %s2629_s11 = sld [smem:[#allocation27 + $0xf]] }
 0x70b   : > { %v1450_v2 = vadd.f32 %v1449_v51, %v1407_v11  ;;  %v1527_v4 = vmax.f32 %v1526_v16, 0.0  ;;  %v1446_v5 = vadd.f32 %v1445_v60, %v1403_v59  ;;  %v1840_v45 = vmul.f32 %v1839_v42, %v4123_v41  ;;  %v2017_v11 = vpop.f32.mrf.mxu3 }
 0x70c   : > { %v1750_v14 = vmax.f32 %v1749_v0, 0.0  ;;  %2856 = vpow2.f32 %v2605_v49  ;;  %v2066_v32 = vstv %s4137_s19  ;;  %s2641_s19 = sld [smem:[#allocation27 + $0x11]] }
 0x70d   : > { %v1493_v15 = vadd.f32 %v1492_v1, %v1450_v2  ;;  %v1528_v17 = vmul.f32 %v1527_v4, %v4014_v58  ;;  %v1489_v21 = vadd.f32 %v1488_v7, %v1446_v5 }
 0x70e   : > { %v1762_v31 = vpop.permute.xlu1 %1761  ;;  %v4110_v57 = vmul.f32 %v1750_v14, %v1589_v6  ;;  %v1956_v56 = vpop.f32.mrf.mxu0 }
 0x70f   : > { %v1786_v10 = vadd.f32 %v1785_v19, %v1762_v31  ;;  %v1531_v22 = vmul.f32 %v1530_v8, %v1528_v17  ;;  %v1535_v23 = vmul.f32 %v1534_v12, %v1528_v17  ;;  %v2020_v60 = vperm.slane %v1956_v56, 0  ;;  %v2080_v1 = vpop.permute.xlu0 %2079 }
 0x710   : > { %v1754_v37 = vmul.f32 %v1753_v29, %v4110_v57  ;;  %v2106_v4 = vperm.slane %v1956_v56, 2  ;;  %v2149_v12 = vperm.slane %v1956_v56, 3  ;;  %v2063_v28 = vperm.slane %v1956_v56, 1 }
 0x711   : > { %v1789_v58 = vadd.f32 %v1788_v13, %v1786_v10  ;;  %v4112_v26 = vadd.f32 %v1531_v22, %v1489_v21  ;;  %v4114_v27 = vadd.f32 %v1535_v23, %v1493_v15  ;;  %v2037_v10 = vpop.permute.xlu2 %2036  ;;  %v2152_v21 = vstv %s4135_s10  ;;  %s2635_s10 = sld [smem:[#allocation27 + $0x10]] }
 0x712   : > { %v1755_v43 = vadd.f32 %v1754_v37, %v1712_v40  ;;  %v2857_v50 = vpop.eup %2856  ;;  %v1986_v37 = vstv %s4139_s29  ;;  %v1549_v19 = vstv %s1537_s20  ;;  %s2642_s29 = sld [smem:[#allocation27 + $0x2]] }
 0x713   : > { %v1792_v34 = vadd.f32 %v1791_v25, %v1789_v58  ;;  %v1538_v35 = vsel %vm983_vm1, %v4112_v26, -inf  ;;  %v1893_v53 = vadd.f32 1.0, %v2857_v50  ;;  %v2114_v50 = vstv %s2634_s27 }
 0x714   : > { %1539 = vmax.xlane.f32.xlu2 %v1538_v35  ;;  %v1985_v35 = vmul.f32 %v1984_v24, %v4049_v18 }
 0x715   : > { %v1793_v36 = vmax.f32 %v1792_v34, 0.0  ;;  %2858 = vrcp.f32 %v1893_v53  ;;  %v1905_v13 = vand.u32 2147483648, %v1893_v53  ;;  %vm1899_vm11 = vweird.f32 %v1893_v53 }
 0x716   : > { %v1903_v15 = vand.u32 2147483647, %v1893_v53 }
 0x717   : > { %v4121_v39 = vmul.f32 %v1793_v36, %v1589_v6  ;;  %v1995_v55 = vpop.permute.xlu1 %1994  ;;  %v1906_v22 = vor.u32 1.1754944e-38, %v1905_v13 }
 0x718   : > { %v2018_v59 = vadd.f32 %v2017_v11, %v1995_v55  ;;  %vm1904_vm13 = vcmp.eq.f32.partialorder %v1903_v15, 8.507059e+37  ;;  %v2157_v55 = vstv %s2640_s26 }
 0x719   : > { %v1797_v30 = vmul.f32 %v1796_v38, %v4121_v39  ;;  %v2028_v38 = vstv %s4141_s7  ;;  %s2179_s7 = sld [smem:[#allocation2]] }
 0x71a   : > { %v2021_v62 = vadd.f32 %v2020_v60, %v2018_v59 }
 0x71b   : > { %v1798_v44 = vadd.f32 %v1797_v30, %v1755_v43  ;;  %v2859_v51 = vpop.eup %2858 }
 0x71c   : > { %v1895_v52 = vmul.f32 %v2859_v51, %v1893_v53  ;;  %vm1900_vm10 = vweird.f32 %v2859_v51  ;;  %v2024_v7 = vadd.f32 %v2023_v63, %v2021_v62 }
 0x71d   : > { %v4127_v46 = vadd.f32 %v1840_v45, %v1798_v44  ;;  %vm4143_vm12 = vmor %vm1899_vm11, %vm1900_vm10  ;;  %v1987_v44 = vadd.f32 %v1986_v37, %v1985_v35  ;;  %v1858_v37 = vstv %s2601_s0  ;;  %s2195_s0 = scalar_lea.sflag [#allocation5], %s3727_s22 }
 0x71e   : > { %v1896_v16 = vsub.f32 1.0, %v1895_v52  ;;  %v2025_v31 = vmax.f32 %v2024_v7, 0.0 }
 0x71f   : > { %v1847_v47 = vsel %vm983_vm1, %v4127_v46, -inf }
 0x720   : > { %1848 = vmax.xlane.f32.xlu1 %v1847_v47  ;;  %v1897_v61 = vmul.f32 %v2859_v51, %v1896_v16  ;;  %v2123_v5 = vpop.permute.xlu1 %2122  ;;  %v2071_v47 = vstv %s2628_s25  ;;  %s2644_s25 = sshll.u32 %s4306_s3, 3 }
 0x722   : > { %v1898_v14 = vadd.f32 %v2859_v51, %v1897_v61 }
 0x724   : > { %v1902_v9 = vsel %vm4143_vm12, %v2859_v51, %v1898_v14 }
 0x725   : > { %v1907_v29 = vsel %vm1904_vm13, %v1906_v22, %v1902_v9 }
 0x726   : > { %v4154_v36 = vmul.f32 %v2025_v31, %v1907_v29 }
 0x728   : > { %v2029_v45 = vmul.f32 %v2028_v38, %v4154_v36 }
 0x72a   : > { %v2030_v53 = vadd.f32 %v2029_v45, %v1987_v44  ;;  %v2075_v45 = vstv %s2629_s11 }
 0x759   : > { %v2146_v0 = vpop.f32.mrf.mxu1 }
 0x75a   : > { %v2147_v8 = vadd.f32 %v2146_v0, %v2123_v5 }
 0x75c   : > { %v2150_v54 = vadd.f32 %v2149_v12, %v2147_v8 }
 0x75e   : > { %v2153_v33 = vadd.f32 %v2152_v21, %v2150_v54 }
 0x760   : > { %v2154_v43 = vmax.f32 %v2153_v33, 0.0 }
 0x762   : > { %v4164_v52 = vmul.f32 %v2154_v43, %v1907_v29 }
 0x764   : > { %v2158_v60 = vmul.f32 %v2157_v55, %v4164_v52  ;;  %v2161_v55 = vstv %s2641_s19 }
 0x771   : > { %v2103_v2 = vpop.f32.mrf.mxu0 }
 0x772   : > { %v2104_v6 = vadd.f32 %v2103_v2, %v2080_v1 }
 0x774   : > { %v2107_v17 = vadd.f32 %v2106_v4, %v2104_v6 }
 0x776   : > { %v2110_v25 = vadd.f32 %v2109_v20, %v2107_v17  ;;  %v1671_v20 = vstv %s2576_s9  ;;  %s4333_s9 = sld [smem:[#allocation61_spill]] }
 0x777   : > { %v1672_v54 = vmul.f32 %v1671_v20, %v4049_v18 }
 0x778   : > { %v2060_v23 = vpop.f32.mrf.mxu2  ;;  %v2111_v40 = vmax.f32 %v2110_v25, 0.0 }
 0x779   : > { %v2061_v58 = vadd.f32 %v2060_v23, %v2037_v10  ;;  %v1714_v10 = vstv %s2582_s2  ;;  %v1757_v23 = vstv %s2588_s5  ;;  %s911_s5 = scalar_lea.vmem [#allocation28], %s3730_s6 }
 0x77a   : > { %v4159_v48 = vmul.f32 %v2111_v40, %v1907_v29  ;;  %v1715_v24 = vmul.f32 %v1714_v10, %v4104_v3 }
 0x77b   : > { %v2064_v34 = vadd.f32 %v2063_v28, %v2061_v58  ;;  %v1800_v58 = vstv %s2594_s23  ;;  %v1758_v28 = vmul.f32 %v1757_v23, %v4110_v57  ;;  %v2032_v57 = vstv %s2623_s8  ;;  %s2207_s23 = sshll.u32 %s911_s5, 4  ;;  %s2208_s23 = int_to_ptr.vmem [resolvable:$true] %s2207_s23 }
 0x77c   : > { %v2115_v11 = vmul.f32 %v2114_v50, %v4159_v48  ;;  %v1801_v33 = vmul.f32 %v1800_v58, %v4121_v39  ;;  %v2033_v39 = vmul.f32 %v2032_v57, %v4154_v36  ;;  %v2118_v50 = vstv %s2635_s10  ;;  %s2205_s2 = scalar_lea.hbm %s4333_s9, %s2644_s25  ;;  %s3286_s6 = scalar_lea.hbm %s4333_s9, 16 }
 0x77d   : > { %v2067_v42 = vadd.f32 %v2066_v32, %v2064_v34  ;;  %v1843_v32 = vstv %s2600_s30  ;;  %s2209_s30 = sshll.u32 %s2205_s2, 4  ;;  %s2210_s30 = int_to_ptr.hbm [resolvable:$true] %s2209_s30 }
 0x77e   : > { %v1844_v38 = vmul.f32 %v1843_v32, %v4123_v41  ;;  %v2119_v41 = vmul.f32 %v2118_v50, %v4159_v48 }
 0x77f   : > { %v2068_v30 = vmax.f32 %v2067_v42, 0.0 }
 0x781   : > { %v4161_v49 = vmul.f32 %v2068_v30, %v1907_v29 }
 0x783   : > { %v2072_v51 = vmul.f32 %v2071_v47, %v4161_v49 }
 0x785   : > { %v2073_v56 = vadd.f32 %v2072_v51, %v2030_v53  ;;  %v2076_v53 = vmul.f32 %v2075_v45, %v4161_v49 }
 0x787   : > { %v1540_v16 = vpop.xlane.xlu2 %1539  ;;  %v2116_v59 = vadd.f32 %v2115_v11, %v2073_v56 }
 0x788   : > { %v1541_v61 = vsub.f32 %v4112_v26, %v1540_v16  ;;  %v2162_v16 = vmul.f32 %v2161_v55, %v4164_v52 }
 0x789   : > { %v2159_v62 = vadd.f32 %v2158_v60, %v2116_v59 }
 0x78a   : > { %v1542_v63 = vmul.f32 1.442695, %v1541_v61  ;;  %v2176_v61 = vstv %s2642_s29 }
 0x78b   : > { %v2165_v0 = vsel %vm983_vm1, %v2159_v62, -inf }
 0x78c   : > { %2860 = vpow2.f32 %v1542_v63  ;;  %2166 = vmax.xlane.f32.xlu0 %v2165_v0  ;;  %v2180_v63 = vstv %s2179_s7 }
 0x792   : > { %v2861_v1 = vpop.eup %2860 }
 0x793   : > { %v1849_v2 = vpop.xlane.xlu1 %1848  ;;  %v1544_v4 = vsel %vm983_vm1, %v2861_v1, 0.0 }
 0x794   : > { %v1850_v5 = vsub.f32 %v4127_v46, %v1849_v2  ;;  %1545 = vadd.xlane.f32.xlu2 %v1544_v4 }
 0x796   : > { %v1851_v6 = vmul.f32 1.442695, %v1850_v5 }
 0x798   : > { %2862 = vpow2.f32 %v1851_v6 }
 0x79e   : > { %v2863_v7 = vpop.eup %2862 }
 0x79f   : > { %v1853_v8 = vsel %vm983_vm1, %v2863_v7, 0.0 }
 0x7a0   : > { %1854 = vadd.xlane.f32.xlu2 %v1853_v8 }
 0x7ff   : > { %v2167_v26 = vpop.xlane.xlu0 %2166 }
 0x800   : > { %v2168_v12 = vsub.f32 %v2159_v62, %v2167_v26 }
 0x802   : > { %v2169_v14 = vmul.f32 1.442695, %v2168_v12 }
 0x804   : > { %2864 = vpow2.f32 %v2169_v14 }
 0x807   : > { %v1546_v13 = vpop.xlane.xlu2 %1545 }
 0x808   : > { %2866 = vrcp.f32 %v1546_v13 }
 0x80a   : > { %v2865_v15 = vpop.eup %2864 }
 0x80b   : > { %v2171_v17 = vsel %vm983_vm1, %v2865_v15, 0.0 }
 0x80c   : > { %2172 = vadd.xlane.f32.xlu1 %v2171_v17 }
 0x80e   : > { %v2867_v46 = vpop.eup %2866 }
 0x80f   : > { %v1548_v31 = vmul.f32 %v2867_v46, %v2861_v1 }
 0x811   : > { %v1550_v9 = vmul.f32 %v1549_v19, %v1548_v31 }
 0x813   : > { %v1551_v21 = vadd.f32 %v1550_v9, %v4114_v27  ;;  %v1855_v22 = vpop.xlane.xlu2 %1854  ;;  %v1989_v27 = vstv %s2617_s1  ;;  %s3280_s1 = sshra.s32 %s2210_s30, 4  ;;  %s3281_s1 = int_to_ptr.hbm [resolvable:$true] %s3280_s1 }
 0x814   : > { %2868 = vrcp.f32 %v1855_v22  ;;  %v1990_v43 = vmul.f32 %v1989_v27, %v4049_v18  ;;  %s3282_s3 = scalar_lea.hbm %s3281_s1, 8  ;;  %p3287_p13 = scmp.lt.s32.totalorder %s3281_s1, %s4333_s9 }
 0x815   : > { %v1673_v25 = vadd.f32 %v1672_v54, %v1551_v21  ;;  %p3283_p12 = scmp.ne.s32.totalorder %s3281_s1, %s3282_s3  ;;  %p3288_p1 = scmp.lt.s32.totalorder %s3286_s6, %s3282_s3 }
 0x817   : > { %v1716_v29 = vadd.f32 %v1715_v24, %v1673_v25  ;;  %p3284_p2 = pnand %p3283_p12, %p3581_p0  ;;  %p3289_p8 = por %p3288_p1, %p3287_p13 }
 0x819   : > { %v1759_v34 = vadd.f32 %v1758_v28, %v1716_v29  ;;  %p3285_p5 = pneg %p3284_p2 }
 0x81a   : > { %v2869_v35 = vpop.eup %2868 }
 0x81b   : > { %v1802_v40 = vadd.f32 %v1801_v33, %v1759_v34  ;;  %v1857_v42 = vmul.f32 %v2869_v35, %v2863_v7  ;;  %p3290_p10 = pnand %p3289_p8, %p3285_p5 }
 0x81d   : > { %v1845_v3 = vadd.f32 %v1844_v38, %v1802_v40  ;;  %v1859_v30 = vmul.f32 %v1858_v37, %v1857_v42 }
 0x81f   : > { %v1860_v44 = vadd.f32 %v1859_v30, %v1845_v3 }
 0x821   : > { %v1991_v47 = vadd.f32 %v1990_v43, %v1860_v44 }
 0x823   : > { %v2034_v51 = vadd.f32 %v2033_v39, %v1991_v47 }
 0x825   : > { %v2077_v56 = vadd.f32 %v2076_v53, %v2034_v51 }
 0x827   : > { %v2120_v11 = vadd.f32 %v2119_v41, %v2077_v56 }
 0x829   : > { %v2163_v59 = vadd.f32 %v2162_v16, %v2120_v11 }
 0x87f   : > { %v2173_v18 = vpop.xlane.xlu1 %2172 }
 0x880   : > { %2870 = vrcp.f32 %v2173_v18 }
 0x886   : > { %v2871_v60 = vpop.eup %2870 }
 0x887   : > { %v2175_v36 = vmul.f32 %v2871_v60, %v2865_v15 }
 0x889   : > { %v2177_v62 = vmul.f32 %v2176_v61, %v2175_v36 }
 0x88b   : > { %v2178_v49 = vadd.f32 %v2177_v62, %v2163_v59 }
 0x88d   : > { %v2181_v0 = vadd.f32 %v2180_v63, %v2178_v49 }
 0x88f   : > { %v2182_v48 = vsel %vm983_vm1, %v2181_v0, -inf }
 0x890   : > { %2183 = vmax.xlane.f32.xlu2 %v2182_v48 }
 0x903   : > { %v2184_v1 = vpop.xlane.xlu2 %2183 }
 0x904   : > { %v2185_v2 = vsub.f32 %v2181_v0, %v2184_v1 }
 0x906   : > { %v2186_v52 = vmul.f32 1.442695, %v2185_v2 }
 0x908   : > { %2872 = vpow2.f32 %v2186_v52 }
 0x90e   : > { %v2873_v4 = vpop.eup %2872 }
 0x90f   : > { %v2188_v5 = vsel %vm983_vm1, %v2873_v4, 0.0 }
 0x910   : > { %2189 = vadd.xlane.f32.xlu0 %v2188_v5 }
 0x983   : > { %v2190_v6 = vpop.xlane.xlu0 %2189 }
 0x984   : > { %2874 = vrcp.f32 %v2190_v6 }
 0x98a   : > { %v2875_v7 = vpop.eup %2874 }
 0x98b   : > { %v2192_v8 = vmul.f32 %v2875_v7, %v2873_v4 }
 0x98d   : > { %2193 = vst.msk [vmem:[%s911_s5] sm:$0xff] %vm983_vm1, %v2192_v8 }
 0x98e   : > { %3293 = shalt.err (!%p3290_p10)
}
 0x98f   : > { %2701 = dma.vmem_to_hbm [thread:$0]  (%p3581_p0), %s2208_s23, 128, %s2210_s30, %s2195_s0  }
 0x990 PF: > { %s4334_s22 = sld [smem:[#allocation40_spill]]  ;;  %p4336_p6 = scmp.ge.s32.totalorder %s3368_s18, 2 }
 0x992   : > { %p2751_p11 = pnand %p4336_p6, %p3589_p4 }
 0x994   : > { %p2752_p3 = pneg %p2751_p11 }
 0x996   : > { %s2221_s7 = sand.u32 1, %s4334_s22  }
 0x997   : > { %s2222_s25 = scalar_lea.sflag [#allocation5], %s2221_s7 }
 0x998   : > { %3351 = dma.done.wait (%p2752_p3), %s2222_s25, 128  }
 0x999   : > { %3353 = vsyncadd (%p2752_p3), %s2222_s25, 4294967168  ;;  %s4337_s18 = sld [smem:[#allocation43_spill]]  ;;  %s4340_s20 = smov %s3360_s21 }
 0x99a   : > { %s4338_s26 = sld [smem:[#allocation41_spill]] }
 0x99b   : > { %s4339_s1 = sld [smem:[#allocation44_spill]] }
 0x99f   : > { %p45_p7 = scmp.ge.s32.totalorder %s4337_s18, 4  }
 0x9a0   : > { %s4341_s21 = smov %s4338_s26 }
 0x9a1   :  { %47 = sbr.rel (!%p45_p7) target bundleno = 31 (0x1f), region = 233 }
 0x9a6   :  { %2228 = vsyncpa [#allocation4], 1 }
 0x9a7   :  { %2230 = vsyncpa [#allocation4 + $0x1], 1 }
 0x9a8   :  { %2231 = vsyncpa [#allocation9], 1 }
 0x9a9   :  { %2233 = vsyncpa [#allocation9 + $0x1], 1 }
 0x9aa   :  { %2234 = vsyncpa [#allocation12], 1 }
 0x9ab   :  { %2236 = vsyncpa [#allocation12 + $0x1], 1 }
 0x9ac   :  { %2237 = vsyncpa [#allocation15], 1 }
 0x9ad   :  { %2238 = vsyncpa [#allocation18], 1 }
 0x9ae   :  { %2239 = vsyncpa [#allocation21], 1 }
 0x9af   :  { %2240 = vsyncpa [#allocation5], 1 }
 0x9b0   :  { %2242 = vsyncpa [#allocation5 + $0x1], 1 }
 0x9b1   :  { %2243 = vsyncpa [#allocation6], 1 }
 0x9b2   :  { %2245 = vsyncpa [#allocation6 + $0x1], 1 }
 0x9b3   :  { %2246 = vsyncpa [#allocation7], 1 }
 0x9b4   :  { %2248 = vsyncpa [#allocation7 + $0x1], 1 }
 0x9b5   :  { %2249 = vsyncpa [#allocation26], 1 }

</bundles_post_ra>
